<compile_context>
chip_gen: v7x
topology: tpu7x:2x2x1
jax: 0.10.0
libtpu: 0.0.40
codegen_flags: <defaults>
</compile_context>

<pallas_src>
import math
import jax
import jax.numpy as jnp
from jax.experimental import pallas as pl
from jax.experimental.pallas import tpu as pltpu

# ----- problem sizes (small, consistent with the module's forward) -----
T = 3        # num tasks (module requires >= 2)
B = 8        # batch per task
D = 32       # input feature dim
L = 16       # latent dim
O = 8        # target dim
LP = 2       # latent_num_particles
CP = 2       # classifier_num_particles
TASK_NUM_SAMPLES = jnp.array([64.0, 80.0, 96.0], dtype=jnp.float32)
_LOG_2PI = math.log(2.0 * math.pi)


# --------------------------- fused Pallas kernel ---------------------------

def _fused_elbo_kernel(x_ref, y_ref, w_enc_ref, b_enc_ref, sz_ref,
                       mu_w_ref, sw_ref, eps_z_ref, cls_ref,
                       lat_mix_ref, cls_mix_ref, scale_ref, out_ref):
    # x:(T,B,D)  y:(T,LP*B,CP*O)  w_enc:(T,D,L)  b_enc:(T,1,L)  sz:(T,1,L)
    # mu_w,sw:(T,L,O)  eps_z:(T,LP,B,L)  cls:(T,L,CP*O)
    # lat_mix,cls_mix:(T,T) SMEM   scale:(T,) SMEM   out:(4,) SMEM
    t, b, _ = x_ref.shape
    lp = eps_z_ref.shape[1]
    l = eps_z_ref.shape[3]
    o = sw_ref.shape[-1]
    co = cls_ref.shape[-1]            # CP * O
    cp = co // o

    # ---------- hoisted per-task precomputes (logs / reciprocals once) ----------
    log_sz, var_z, inv2_z = [], [], []        # latent scale stats   (1, L)
    log_sw, var_w, inv2_w = [], [], []        # classifier stats     (L, O)
    for j in range(t):
        s = sz_ref[j]
        v = s * s
        log_sz.append(jnp.log(s)); var_z.append(v); inv2_z.append(0.5 / v)
        sw = sw_ref[j]
        vw = sw * sw
        log_sw.append(jnp.log(sw)); var_w.append(vw); inv2_w.append(0.5 / vw)

    # Pairwise encoder means M[i][j] = x_i @ W_j + b_j computed ONCE and reused
    # for both the reparameterized latent sample (diagonal) and the latent KL.
    m = [[None] * t for _ in range(t)]
    for i in range(t):
        x_i = x_ref[i]                                            # (B, D)
        for j in range(t):
            m[i][j] = (jnp.dot(x_i, w_enc_ref[j],
                               preferred_element_type=jnp.float32)
                       + b_enc_ref[j])                            # (B, L)

    # ---------- likelihood:  -E_q[log p(y|z,w)] ----------
    # One (LP*B, L) @ (L, CP*O) matmul per task covers all LP*CP particle pairs.
    acc_lh = jnp.zeros((lp * b, co), jnp.float32)
    for i in range(t):
        z = m[i][i][None, :, :] + sz_ref[i][None] * eps_z_ref[i]  # (LP, B, L)
        z2 = z.reshape(lp * b, l)                                 # leading-dim collapse
        pred = jnp.dot(z2, cls_ref[i], preferred_element_type=jnp.float32)
        dlt = pred - y_ref[i]                                     # (LP*B, CP*O)
        acc_lh = acc_lh + scale_ref[i] * (dlt * dlt)
    scale_sum = scale_ref[0]
    for i in range(1, t):
        scale_sum = scale_sum + scale_ref[i]
    # -log N(y|mu,1) = 0.5*(y-mu)^2 + 0.5*log(2*pi); mean over (LP,CP) particles,
    # sum over batch, then (as in the reference) mean over the stacked (T, O).
    lh_sum = (0.5 * jnp.sum(acc_lh) / float(lp * cp)
              + 0.5 * _LOG_2PI * float(b * o) * scale_sum)
    lh_val = lh_sum / float(t * o)

    # ---------- latent KL:  sum_b sum_{j!=i} mix[i,j] KL(q_i(z|x_i)||q_j(z|x_i)) ----------
    acc_lat = jnp.zeros((b, l), jnp.float32)
    for i in range(t):
        for j in range(t):
            if j == i:
                continue          # mix[i,i] == 0 exactly (Gumbel -inf diag mask)
            dm = m[i][i] - m[i][j]
            kl = ((log_sz[j] - log_sz[i] - 0.5)
                  + (var_z[i] + dm * dm) * inv2_z[j])             # (B, L)
            acc_lat = acc_lat + (scale_ref[i] * lat_mix_ref[i, j]) * kl
    lat_kl = jnp.sum(acc_lat) / float(t)          # mean over tasks

    # ---------- classifier KL:  sum_{j!=i} mix[i,j] KL(q_i(w)||q_j(w)) ----------
    acc_cls = jnp.zeros((l, o), jnp.float32)
    for i in range(t):
        mu_i = mu_w_ref[i]
        for j in range(t):
            if j == i:
                continue
            dmu = mu_i - mu_w_ref[j]
            kl = ((log_sw[j] - log_sw[i] - 0.5)
                  + (var_w[i] + dmu * dmu) * inv2_w[j])           # (L, O)
            acc_cls = acc_cls + cls_mix_ref[i, j] * kl
    cls_kl = jnp.sum(acc_cls) / float(t)          # mean over tasks

    out_ref[0] = lh_val + lat_kl + cls_kl
    out_ref[1] = lh_val
    out_ref[2] = lat_kl
    out_ref[3] = cls_kl


def fused_elbo(data, y_tiled, w_enc, b_enc, sigma_z, mu_w, sigma_w,
               eps_z, cls_flat, lat_mix, cls_mix, scale):
    vmem = pl.BlockSpec(memory_space=pltpu.MemorySpace.VMEM)
    smem = pl.BlockSpec(memory_space=pltpu.MemorySpace.SMEM)
    return pl.pallas_call(
        _fused_elbo_kernel,
        out_shape=jax.ShapeDtypeStruct((4,), jnp.float32),   # [elbo, lh, lat_kl, cls_kl]
        in_specs=[vmem] * 9 + [smem] * 3,
        out_specs=smem,
    )(data, y_tiled, w_enc, b_enc, sigma_z, mu_w, sigma_w,
      eps_z, cls_flat, lat_mix, cls_mix, scale)


# --------------------------- plain-JAX glue ---------------------------
# TODO(synk): Gumbel-softmax mixing + reparameterization noise use jax.random in
# the wrapper (matching torch .rsample semantics); they are not moved into the
# kernel (pltpu PRNG would change the sampling stream, not the math).

def gumbel_softmax_mixing(key, mixing_params, temp):
    t = mixing_params.shape[0]
    mask = jnp.where(jnp.eye(t, dtype=bool), -jnp.inf, 0.0)
    g = jax.random.gumbel(key, (t, t), dtype=jnp.float32)
    logits = (g + jnp.log(mixing_params)) / temp + mask
    return jax.nn.softmax(logits, axis=1)


def init_params(key):
    ks = jax.random.split(key, 5)
    return {
        # both classifier and latent mixings share ONE parameter (as in the module)
        "mixing": jnp.full((T, T), 1.0 / (T - 1), dtype=jnp.float32),
        "w_enc": 0.2 * jax.random.normal(ks[0], (T, D, L), dtype=jnp.float32),
        "b_enc": 0.1 * jax.random.normal(ks[1], (T, L), dtype=jnp.float32),
        "sigma_z": 0.5 + 0.5 * jax.random.uniform(ks[2], (T, L), dtype=jnp.float32),
        "mu_w": 0.3 * jax.random.normal(ks[3], (T, L, O), dtype=jnp.float32),
        "sigma_w": 0.5 + 0.5 * jax.random.uniform(ks[4], (T, L, O), dtype=jnp.float32),
    }


@jax.jit
def multitask_elbo(params, data, targets, rng, step):
    del step
    temp = 1.0  # temp_scheduler == 'const' -> lambda t: 1.0
    k_cmix, k_lmix, k_w, k_z = jax.random.split(rng, 4)

    classifier_mixing = gumbel_softmax_mixing(k_cmix, params["mixing"], temp)
    latent_mixing = gumbel_softmax_mixing(k_lmix, params["mixing"], temp)

    # q(w|D) rsample -> (T, CP, L, O); particles flattened lane-wise to (T, L, CP*O)
    # so the kernel covers all LP*CP particle pairs with one MXU push per task.
    eps_w = jax.random.normal(k_w, (T, CP, L, O), dtype=jnp.float32)
    classifiers = params["mu_w"][:, None] + params["sigma_w"][:, None] * eps_w
    cls_flat = jnp.transpose(classifiers, (0, 2, 1, 3)).reshape(T, L, CP * O)

    # q(z|x,D) reparameterization noise, particle-major so the in-kernel
    # (LP, B, L) -> (LP*B, L) reshape is a pure leading-dim collapse.
    eps_z = jax.random.normal(k_z, (T, LP, B, L), dtype=jnp.float32)

    # Targets pre-tiled (tiny, 3 KB) to match the (LP*B, CP*O) prediction layout.
    y_tiled = jnp.tile(targets, (1, LP, CP))

    scale = TASK_NUM_SAMPLES / float(B)                           # (T,)

    res = fused_elbo(
        data, y_tiled,
        params["w_enc"],
        params["b_enc"].reshape(T, 1, L),
        params["sigma_z"].reshape(T, 1, L),
        params["mu_w"], params["sigma_w"],
        eps_z, cls_flat,
        latent_mixing, classifier_mixing, scale)

    return {"elbo": res[0], "lh_loss": res[1], "lat_kl": res[2], "cls_kl": res[3]}


if __name__ == "__main__":
    key = jax.random.PRNGKey(0)
    k_param, k_data, k_targ, k_fwd = jax.random.split(key, 4)
    params = init_params(k_param)
    data = jax.random.normal(k_data, (T, B, D), dtype=jnp.float32)
    targets = jax.random.normal(k_targ, (T, B, O), dtype=jnp.float32)

    out = multitask_elbo(params, data, targets, k_fwd, 0)
    out = jax.block_until_ready(out)
    assert all(bool(jnp.isfinite(v)) for v in out.values()), out
    print("KERNEL_OK")
</pallas_src>

<mosaic_0001>
module attributes {stable_mosaic.version = 11 : i64} {
  func.func @_fused_elbo_kernel(%arg0: memref<3x8x32xf32, #tpu.memory_space<vmem>>, %arg1: memref<3x16x16xf32, #tpu.memory_space<vmem>>, %arg2: memref<3x32x16xf32, #tpu.memory_space<vmem>>, %arg3: memref<3x1x16xf32, #tpu.memory_space<vmem>>, %arg4: memref<3x1x16xf32, #tpu.memory_space<vmem>>, %arg5: memref<3x16x8xf32, #tpu.memory_space<vmem>>, %arg6: memref<3x16x8xf32, #tpu.memory_space<vmem>>, %arg7: memref<3x2x8x16xf32, #tpu.memory_space<vmem>>, %arg8: memref<3x16x16xf32, #tpu.memory_space<vmem>>, %arg9: memref<3x3xf32, #tpu.memory_space<smem>>, %arg10: memref<3x3xf32, #tpu.memory_space<smem>>, %arg11: memref<3xf32, #tpu.memory_space<smem>>, %arg12: memref<4xf32, #tpu.memory_space<smem>>) attributes {dimension_semantics = [], scalar_prefetch = 0 : i64, scratch_operands = 0 : i64, tpu.core_type = #tpu.core_type<tc>} {
    %c0 = arith.constant 0 : index
    %c0_0 = arith.constant 0 : index
    %c0_1 = arith.constant 0 : index
    %0 = vector.load %arg4[%c0, %c0_0, %c0_1] : memref<3x1x16xf32, #tpu.memory_space<vmem>>, vector<1x1x16xf32>
    %1 = vector.shape_cast %0 : vector<1x1x16xf32> to vector<1x16xf32>
    %2 = arith.mulf %1, %1 : vector<1x16xf32>
    %3 = math.log %1 : vector<1x16xf32>
    %cst = arith.constant 5.000000e-01 : f32
    %4 = vector.broadcast %cst : f32 to vector<1x16xf32>
    %5 = arith.divf %4, %2 : vector<1x16xf32>
    %c0_2 = arith.constant 0 : index
    %c0_3 = arith.constant 0 : index
    %c0_4 = arith.constant 0 : index
    %6 = vector.load %arg6[%c0_2, %c0_3, %c0_4] : memref<3x16x8xf32, #tpu.memory_space<vmem>>, vector<1x16x8xf32>
    %7 = vector.shape_cast %6 : vector<1x16x8xf32> to vector<16x8xf32>
    %8 = arith.mulf %7, %7 : vector<16x8xf32>
    %9 = math.log %7 : vector<16x8xf32>
    %cst_5 = arith.constant 5.000000e-01 : f32
    %10 = vector.broadcast %cst_5 : f32 to vector<16x8xf32>
    %11 = arith.divf %10, %8 : vector<16x8xf32>
    %c1 = arith.constant 1 : index
    %c0_6 = arith.constant 0 : index
    %c0_7 = arith.constant 0 : index
    %12 = vector.load %arg4[%c1, %c0_6, %c0_7] : memref<3x1x16xf32, #tpu.memory_space<vmem>>, vector<1x1x16xf32>
    %13 = vector.shape_cast %12 : vector<1x1x16xf32> to vector<1x16xf32>
    %14 = arith.mulf %13, %13 : vector<1x16xf32>
    %15 = math.log %13 : vector<1x16xf32>
    %cst_8 = arith.constant 5.000000e-01 : f32
    %16 = vector.broadcast %cst_8 : f32 to vector<1x16xf32>
    %17 = arith.divf %16, %14 : vector<1x16xf32>
    %c1_9 = arith.constant 1 : index
    %c0_10 = arith.constant 0 : index
    %c0_11 = arith.constant 0 : index
    %18 = vector.load %arg6[%c1_9, %c0_10, %c0_11] : memref<3x16x8xf32, #tpu.memory_space<vmem>>, vector<1x16x8xf32>
    %19 = vector.shape_cast %18 : vector<1x16x8xf32> to vector<16x8xf32>
    %20 = arith.mulf %19, %19 : vector<16x8xf32>
    %21 = math.log %19 : vector<16x8xf32>
    %cst_12 = arith.constant 5.000000e-01 : f32
    %22 = vector.broadcast %cst_12 : f32 to vector<16x8xf32>
    %23 = arith.divf %22, %20 : vector<16x8xf32>
    %c2 = arith.constant 2 : index
    %c0_13 = arith.constant 0 : index
    %c0_14 = arith.constant 0 : index
    %24 = vector.load %arg4[%c2, %c0_13, %c0_14] : memref<3x1x16xf32, #tpu.memory_space<vmem>>, vector<1x1x16xf32>
    %25 = vector.shape_cast %24 : vector<1x1x16xf32> to vector<1x16xf32>
    %26 = arith.mulf %25, %25 : vector<1x16xf32>
    %27 = math.log %25 : vector<1x16xf32>
    %cst_15 = arith.constant 5.000000e-01 : f32
    %28 = vector.broadcast %cst_15 : f32 to vector<1x16xf32>
    %29 = arith.divf %28, %26 : vector<1x16xf32>
    %c2_16 = arith.constant 2 : index
    %c0_17 = arith.constant 0 : index
    %c0_18 = arith.constant 0 : index
    %30 = vector.load %arg6[%c2_16, %c0_17, %c0_18] : memref<3x16x8xf32, #tpu.memory_space<vmem>>, vector<1x16x8xf32>
    %31 = vector.shape_cast %30 : vector<1x16x8xf32> to vector<16x8xf32>
    %32 = arith.mulf %31, %31 : vector<16x8xf32>
    %33 = math.log %31 : vector<16x8xf32>
    %cst_19 = arith.constant 5.000000e-01 : f32
    %34 = vector.broadcast %cst_19 : f32 to vector<16x8xf32>
    %35 = arith.divf %34, %32 : vector<16x8xf32>
    %c0_20 = arith.constant 0 : index
    %c0_21 = arith.constant 0 : index
    %c0_22 = arith.constant 0 : index
    %36 = vector.load %arg0[%c0_20, %c0_21, %c0_22] : memref<3x8x32xf32, #tpu.memory_space<vmem>>, vector<1x8x32xf32>
    %37 = vector.shape_cast %36 : vector<1x8x32xf32> to vector<8x32xf32>
    %c0_23 = arith.constant 0 : index
    %c0_24 = arith.constant 0 : index
    %c0_25 = arith.constant 0 : index
    %38 = vector.load %arg2[%c0_23, %c0_24, %c0_25] : memref<3x32x16xf32, #tpu.memory_space<vmem>>, vector<1x32x16xf32>
    %39 = vector.shape_cast %38 : vector<1x32x16xf32> to vector<32x16xf32>
    %cst_26 = arith.constant dense<0.000000e+00> : vector<8x16xf32>
    %40 = tpu.matmul %37, %39, %cst_26 {dimension_numbers = #tpu.dot_dimension_numbers<[1], [0], [0], [1], [0, 0, 1, 1], [], []>} : vector<8x32xf32>, vector<32x16xf32>, vector<8x16xf32> -> vector<8x16xf32>
    %c0_27 = arith.constant 0 : index
    %c0_28 = arith.constant 0 : index
    %c0_29 = arith.constant 0 : index
    %41 = vector.load %arg3[%c0_27, %c0_28, %c0_29] : memref<3x1x16xf32, #tpu.memory_space<vmem>>, vector<1x1x16xf32>
    %42 = vector.shape_cast %41 : vector<1x1x16xf32> to vector<1x16xf32>
    %43 = vector.broadcast %42 : vector<1x16xf32> to vector<8x16xf32>
    %44 = arith.addf %40, %43 : vector<8x16xf32>
    %c1_30 = arith.constant 1 : index
    %c0_31 = arith.constant 0 : index
    %c0_32 = arith.constant 0 : index
    %45 = vector.load %arg2[%c1_30, %c0_31, %c0_32] : memref<3x32x16xf32, #tpu.memory_space<vmem>>, vector<1x32x16xf32>
    %46 = vector.shape_cast %45 : vector<1x32x16xf32> to vector<32x16xf32>
    %cst_33 = arith.constant dense<0.000000e+00> : vector<8x16xf32>
    %47 = tpu.matmul %37, %46, %cst_33 {dimension_numbers = #tpu.dot_dimension_numbers<[1], [0], [0], [1], [0, 0, 1, 1], [], []>} : vector<8x32xf32>, vector<32x16xf32>, vector<8x16xf32> -> vector<8x16xf32>
    %c1_34 = arith.constant 1 : index
    %c0_35 = arith.constant 0 : index
    %c0_36 = arith.constant 0 : index
    %48 = vector.load %arg3[%c1_34, %c0_35, %c0_36] : memref<3x1x16xf32, #tpu.memory_space<vmem>>, vector<1x1x16xf32>
    %49 = vector.shape_cast %48 : vector<1x1x16xf32> to vector<1x16xf32>
    %50 = vector.broadcast %49 : vector<1x16xf32> to vector<8x16xf32>
    %51 = arith.addf %47, %50 : vector<8x16xf32>
    %c2_37 = arith.constant 2 : index
    %c0_38 = arith.constant 0 : index
    %c0_39 = arith.constant 0 : index
    %52 = vector.load %arg2[%c2_37, %c0_38, %c0_39] : memref<3x32x16xf32, #tpu.memory_space<vmem>>, vector<1x32x16xf32>
    %53 = vector.shape_cast %52 : vector<1x32x16xf32> to vector<32x16xf32>
    %cst_40 = arith.constant dense<0.000000e+00> : vector<8x16xf32>
    %54 = tpu.matmul %37, %53, %cst_40 {dimension_numbers = #tpu.dot_dimension_numbers<[1], [0], [0], [1], [0, 0, 1, 1], [], []>} : vector<8x32xf32>, vector<32x16xf32>, vector<8x16xf32> -> vector<8x16xf32>
    %c2_41 = arith.constant 2 : index
    %c0_42 = arith.constant 0 : index
    %c0_43 = arith.constant 0 : index
    %55 = vector.load %arg3[%c2_41, %c0_42, %c0_43] : memref<3x1x16xf32, #tpu.memory_space<vmem>>, vector<1x1x16xf32>
    %56 = vector.shape_cast %55 : vector<1x1x16xf32> to vector<1x16xf32>
    %57 = vector.broadcast %56 : vector<1x16xf32> to vector<8x16xf32>
    %58 = arith.addf %54, %57 : vector<8x16xf32>
    %c1_44 = arith.constant 1 : index
    %c0_45 = arith.constant 0 : index
    %c0_46 = arith.constant 0 : index
    %59 = vector.load %arg0[%c1_44, %c0_45, %c0_46] : memref<3x8x32xf32, #tpu.memory_space<vmem>>, vector<1x8x32xf32>
    %60 = vector.shape_cast %59 : vector<1x8x32xf32> to vector<8x32xf32>
    %c0_47 = arith.constant 0 : index
    %c0_48 = arith.constant 0 : index
    %c0_49 = arith.constant 0 : index
    %61 = vector.load %arg2[%c0_47, %c0_48, %c0_49] : memref<3x32x16xf32, #tpu.memory_space<vmem>>, vector<1x32x16xf32>
    %62 = vector.shape_cast %61 : vector<1x32x16xf32> to vector<32x16xf32>
    %cst_50 = arith.constant dense<0.000000e+00> : vector<8x16xf32>
    %63 = tpu.matmul %60, %62, %cst_50 {dimension_numbers = #tpu.dot_dimension_numbers<[1], [0], [0], [1], [0, 0, 1, 1], [], []>} : vector<8x32xf32>, vector<32x16xf32>, vector<8x16xf32> -> vector<8x16xf32>
    %c0_51 = arith.constant 0 : index
    %c0_52 = arith.constant 0 : index
    %c0_53 = arith.constant 0 : index
    %64 = vector.load %arg3[%c0_51, %c0_52, %c0_53] : memref<3x1x16xf32, #tpu.memory_space<vmem>>, vector<1x1x16xf32>
    %65 = vector.shape_cast %64 : vector<1x1x16xf32> to vector<1x16xf32>
    %66 = vector.broadcast %65 : vector<1x16xf32> to vector<8x16xf32>
    %67 = arith.addf %63, %66 : vector<8x16xf32>
    %c1_54 = arith.constant 1 : index
    %c0_55 = arith.constant 0 : index
    %c0_56 = arith.constant 0 : index
    %68 = vector.load %arg2[%c1_54, %c0_55, %c0_56] : memref<3x32x16xf32, #tpu.memory_space<vmem>>, vector<1x32x16xf32>
    %69 = vector.shape_cast %68 : vector<1x32x16xf32> to vector<32x16xf32>
    %cst_57 = arith.constant dense<0.000000e+00> : vector<8x16xf32>
    %70 = tpu.matmul %60, %69, %cst_57 {dimension_numbers = #tpu.dot_dimension_numbers<[1], [0], [0], [1], [0, 0, 1, 1], [], []>} : vector<8x32xf32>, vector<32x16xf32>, vector<8x16xf32> -> vector<8x16xf32>
    %c1_58 = arith.constant 1 : index
    %c0_59 = arith.constant 0 : index
    %c0_60 = arith.constant 0 : index
    %71 = vector.load %arg3[%c1_58, %c0_59, %c0_60] : memref<3x1x16xf32, #tpu.memory_space<vmem>>, vector<1x1x16xf32>
    %72 = vector.shape_cast %71 : vector<1x1x16xf32> to vector<1x16xf32>
    %73 = vector.broadcast %72 : vector<1x16xf32> to vector<8x16xf32>
    %74 = arith.addf %70, %73 : vector<8x16xf32>
    %c2_61 = arith.constant 2 : index
    %c0_62 = arith.constant 0 : index
    %c0_63 = arith.constant 0 : index
    %75 = vector.load %arg2[%c2_61, %c0_62, %c0_63] : memref<3x32x16xf32, #tpu.memory_space<vmem>>, vector<1x32x16xf32>
    %76 = vector.shape_cast %75 : vector<1x32x16xf32> to vector<32x16xf32>
    %cst_64 = arith.constant dense<0.000000e+00> : vector<8x16xf32>
    %77 = tpu.matmul %60, %76, %cst_64 {dimension_numbers = #tpu.dot_dimension_numbers<[1], [0], [0], [1], [0, 0, 1, 1], [], []>} : vector<8x32xf32>, vector<32x16xf32>, vector<8x16xf32> -> vector<8x16xf32>
    %c2_65 = arith.constant 2 : index
    %c0_66 = arith.constant 0 : index
    %c0_67 = arith.constant 0 : index
    %78 = vector.load %arg3[%c2_65, %c0_66, %c0_67] : memref<3x1x16xf32, #tpu.memory_space<vmem>>, vector<1x1x16xf32>
    %79 = vector.shape_cast %78 : vector<1x1x16xf32> to vector<1x16xf32>
    %80 = vector.broadcast %79 : vector<1x16xf32> to vector<8x16xf32>
    %81 = arith.addf %77, %80 : vector<8x16xf32>
    %c2_68 = arith.constant 2 : index
    %c0_69 = arith.constant 0 : index
    %c0_70 = arith.constant 0 : index
    %82 = vector.load %arg0[%c2_68, %c0_69, %c0_70] : memref<3x8x32xf32, #tpu.memory_space<vmem>>, vector<1x8x32xf32>
    %83 = vector.shape_cast %82 : vector<1x8x32xf32> to vector<8x32xf32>
    %c0_71 = arith.constant 0 : index
    %c0_72 = arith.constant 0 : index
    %c0_73 = arith.constant 0 : index
    %84 = vector.load %arg2[%c0_71, %c0_72, %c0_73] : memref<3x32x16xf32, #tpu.memory_space<vmem>>, vector<1x32x16xf32>
    %85 = vector.shape_cast %84 : vector<1x32x16xf32> to vector<32x16xf32>
    %cst_74 = arith.constant dense<0.000000e+00> : vector<8x16xf32>
    %86 = tpu.matmul %83, %85, %cst_74 {dimension_numbers = #tpu.dot_dimension_numbers<[1], [0], [0], [1], [0, 0, 1, 1], [], []>} : vector<8x32xf32>, vector<32x16xf32>, vector<8x16xf32> -> vector<8x16xf32>
    %c0_75 = arith.constant 0 : index
    %c0_76 = arith.constant 0 : index
    %c0_77 = arith.constant 0 : index
    %87 = vector.load %arg3[%c0_75, %c0_76, %c0_77] : memref<3x1x16xf32, #tpu.memory_space<vmem>>, vector<1x1x16xf32>
    %88 = vector.shape_cast %87 : vector<1x1x16xf32> to vector<1x16xf32>
    %89 = vector.broadcast %88 : vector<1x16xf32> to vector<8x16xf32>
    %90 = arith.addf %86, %89 : vector<8x16xf32>
    %c1_78 = arith.constant 1 : index
    %c0_79 = arith.constant 0 : index
    %c0_80 = arith.constant 0 : index
    %91 = vector.load %arg2[%c1_78, %c0_79, %c0_80] : memref<3x32x16xf32, #tpu.memory_space<vmem>>, vector<1x32x16xf32>
    %92 = vector.shape_cast %91 : vector<1x32x16xf32> to vector<32x16xf32>
    %cst_81 = arith.constant dense<0.000000e+00> : vector<8x16xf32>
    %93 = tpu.matmul %83, %92, %cst_81 {dimension_numbers = #tpu.dot_dimension_numbers<[1], [0], [0], [1], [0, 0, 1, 1], [], []>} : vector<8x32xf32>, vector<32x16xf32>, vector<8x16xf32> -> vector<8x16xf32>
    %c1_82 = arith.constant 1 : index
    %c0_83 = arith.constant 0 : index
    %c0_84 = arith.constant 0 : index
    %94 = vector.load %arg3[%c1_82, %c0_83, %c0_84] : memref<3x1x16xf32, #tpu.memory_space<vmem>>, vector<1x1x16xf32>
    %95 = vector.shape_cast %94 : vector<1x1x16xf32> to vector<1x16xf32>
    %96 = vector.broadcast %95 : vector<1x16xf32> to vector<8x16xf32>
    %97 = arith.addf %93, %96 : vector<8x16xf32>
    %c2_85 = arith.constant 2 : index
    %c0_86 = arith.constant 0 : index
    %c0_87 = arith.constant 0 : index
    %98 = vector.load %arg2[%c2_85, %c0_86, %c0_87] : memref<3x32x16xf32, #tpu.memory_space<vmem>>, vector<1x32x16xf32>
    %99 = vector.shape_cast %98 : vector<1x32x16xf32> to vector<32x16xf32>
    %cst_88 = arith.constant dense<0.000000e+00> : vector<8x16xf32>
    %100 = tpu.matmul %83, %99, %cst_88 {dimension_numbers = #tpu.dot_dimension_numbers<[1], [0], [0], [1], [0, 0, 1, 1], [], []>} : vector<8x32xf32>, vector<32x16xf32>, vector<8x16xf32> -> vector<8x16xf32>
    %c2_89 = arith.constant 2 : index
    %c0_90 = arith.constant 0 : index
    %c0_91 = arith.constant 0 : index
    %101 = vector.load %arg3[%c2_89, %c0_90, %c0_91] : memref<3x1x16xf32, #tpu.memory_space<vmem>>, vector<1x1x16xf32>
    %102 = vector.shape_cast %101 : vector<1x1x16xf32> to vector<1x16xf32>
    %103 = vector.broadcast %102 : vector<1x16xf32> to vector<8x16xf32>
    %104 = arith.addf %100, %103 : vector<8x16xf32>
    %cst_92 = arith.constant 0.000000e+00 : f32
    %105 = vector.broadcast %cst_92 : f32 to vector<16x16xf32>
    %106 = vector.shape_cast %44 : vector<8x16xf32> to vector<1x8x16xf32>
    %c0_93 = arith.constant 0 : index
    %c0_94 = arith.constant 0 : index
    %c0_95 = arith.constant 0 : index
    %107 = vector.load %arg4[%c0_93, %c0_94, %c0_95] : memref<3x1x16xf32, #tpu.memory_space<vmem>>, vector<1x1x16xf32>
    %108 = vector.shape_cast %107 : vector<1x1x16xf32> to vector<1x16xf32>
    %109 = vector.shape_cast %108 : vector<1x16xf32> to vector<1x1x16xf32>
    %c0_96 = arith.constant 0 : index
    %c0_97 = arith.constant 0 : index
    %c0_98 = arith.constant 0 : index
    %c0_99 = arith.constant 0 : index
    %110 = vector.load %arg7[%c0_96, %c0_97, %c0_98, %c0_99] : memref<3x2x8x16xf32, #tpu.memory_space<vmem>>, vector<1x2x8x16xf32>
    %111 = vector.shape_cast %110 : vector<1x2x8x16xf32> to vector<2x8x16xf32>
    %112 = vector.broadcast %109 : vector<1x1x16xf32> to vector<2x8x16xf32>
    %113 = arith.mulf %112, %111 : vector<2x8x16xf32>
    %114 = vector.broadcast %106 : vector<1x8x16xf32> to vector<2x8x16xf32>
    %115 = arith.addf %114, %113 : vector<2x8x16xf32>
    %116 = vector.shape_cast %115 : vector<2x8x16xf32> to vector<16x16xf32>
    %c0_100 = arith.constant 0 : index
    %c0_101 = arith.constant 0 : index
    %c0_102 = arith.constant 0 : index
    %117 = vector.load %arg8[%c0_100, %c0_101, %c0_102] : memref<3x16x16xf32, #tpu.memory_space<vmem>>, vector<1x16x16xf32>
    %118 = vector.shape_cast %117 : vector<1x16x16xf32> to vector<16x16xf32>
    %cst_103 = arith.constant dense<0.000000e+00> : vector<16x16xf32>
    %119 = tpu.matmul %116, %118, %cst_103 {dimension_numbers = #tpu.dot_dimension_numbers<[1], [0], [0], [1], [0, 0, 1, 1], [], []>} : vector<16x16xf32>, vector<16x16xf32>, vector<16x16xf32> -> vector<16x16xf32>
    %c0_104 = arith.constant 0 : index
    %c0_105 = arith.constant 0 : index
    %c0_106 = arith.constant 0 : index
    %120 = vector.load %arg1[%c0_104, %c0_105, %c0_106] : memref<3x16x16xf32, #tpu.memory_space<vmem>>, vector<1x16x16xf32>
    %121 = vector.shape_cast %120 : vector<1x16x16xf32> to vector<16x16xf32>
    %122 = arith.subf %119, %121 : vector<16x16xf32>
    %c0_107 = arith.constant 0 : index
    %123 = memref.load %arg11[%c0_107] : memref<3xf32, #tpu.memory_space<smem>>
    %124 = arith.mulf %122, %122 : vector<16x16xf32>
    %125 = vector.broadcast %123 : f32 to vector<16x16xf32>
    %126 = arith.mulf %125, %124 : vector<16x16xf32>
    %127 = arith.addf %105, %126 : vector<16x16xf32>
    %128 = vector.shape_cast %74 : vector<8x16xf32> to vector<1x8x16xf32>
    %c1_108 = arith.constant 1 : index
    %c0_109 = arith.constant 0 : index
    %c0_110 = arith.constant 0 : index
    %129 = vector.load %arg4[%c1_108, %c0_109, %c0_110] : memref<3x1x16xf32, #tpu.memory_space<vmem>>, vector<1x1x16xf32>
    %130 = vector.shape_cast %129 : vector<1x1x16xf32> to vector<1x16xf32>
    %131 = vector.shape_cast %130 : vector<1x16xf32> to vector<1x1x16xf32>
    %c1_111 = arith.constant 1 : index
    %c0_112 = arith.constant 0 : index
    %c0_113 = arith.constant 0 : index
    %c0_114 = arith.constant 0 : index
    %132 = vector.load %arg7[%c1_111, %c0_112, %c0_113, %c0_114] : memref<3x2x8x16xf32, #tpu.memory_space<vmem>>, vector<1x2x8x16xf32>
    %133 = vector.shape_cast %132 : vector<1x2x8x16xf32> to vector<2x8x16xf32>
    %134 = vector.broadcast %131 : vector<1x1x16xf32> to vector<2x8x16xf32>
    %135 = arith.mulf %134, %133 : vector<2x8x16xf32>
    %136 = vector.broadcast %128 : vector<1x8x16xf32> to vector<2x8x16xf32>
    %137 = arith.addf %136, %135 : vector<2x8x16xf32>
    %138 = vector.shape_cast %137 : vector<2x8x16xf32> to vector<16x16xf32>
    %c1_115 = arith.constant 1 : index
    %c0_116 = arith.constant 0 : index
    %c0_117 = arith.constant 0 : index
    %139 = vector.load %arg8[%c1_115, %c0_116, %c0_117] : memref<3x16x16xf32, #tpu.memory_space<vmem>>, vector<1x16x16xf32>
    %140 = vector.shape_cast %139 : vector<1x16x16xf32> to vector<16x16xf32>
    %cst_118 = arith.constant dense<0.000000e+00> : vector<16x16xf32>
    %141 = tpu.matmul %138, %140, %cst_118 {dimension_numbers = #tpu.dot_dimension_numbers<[1], [0], [0], [1], [0, 0, 1, 1], [], []>} : vector<16x16xf32>, vector<16x16xf32>, vector<16x16xf32> -> vector<16x16xf32>
    %c1_119 = arith.constant 1 : index
    %c0_120 = arith.constant 0 : index
    %c0_121 = arith.constant 0 : index
    %142 = vector.load %arg1[%c1_119, %c0_120, %c0_121] : memref<3x16x16xf32, #tpu.memory_space<vmem>>, vector<1x16x16xf32>
    %143 = vector.shape_cast %142 : vector<1x16x16xf32> to vector<16x16xf32>
    %144 = arith.subf %141, %143 : vector<16x16xf32>
    %c1_122 = arith.constant 1 : index
    %145 = memref.load %arg11[%c1_122] : memref<3xf32, #tpu.memory_space<smem>>
    %146 = arith.mulf %144, %144 : vector<16x16xf32>
    %147 = vector.broadcast %145 : f32 to vector<16x16xf32>
    %148 = arith.mulf %147, %146 : vector<16x16xf32>
    %149 = arith.addf %127, %148 : vector<16x16xf32>
    %150 = vector.shape_cast %104 : vector<8x16xf32> to vector<1x8x16xf32>
    %c2_123 = arith.constant 2 : index
    %c0_124 = arith.constant 0 : index
    %c0_125 = arith.constant 0 : index
    %151 = vector.load %arg4[%c2_123, %c0_124, %c0_125] : memref<3x1x16xf32, #tpu.memory_space<vmem>>, vector<1x1x16xf32>
    %152 = vector.shape_cast %151 : vector<1x1x16xf32> to vector<1x16xf32>
    %153 = vector.shape_cast %152 : vector<1x16xf32> to vector<1x1x16xf32>
    %c2_126 = arith.constant 2 : index
    %c0_127 = arith.constant 0 : index
    %c0_128 = arith.constant 0 : index
    %c0_129 = arith.constant 0 : index
    %154 = vector.load %arg7[%c2_126, %c0_127, %c0_128, %c0_129] : memref<3x2x8x16xf32, #tpu.memory_space<vmem>>, vector<1x2x8x16xf32>
    %155 = vector.shape_cast %154 : vector<1x2x8x16xf32> to vector<2x8x16xf32>
    %156 = vector.broadcast %153 : vector<1x1x16xf32> to vector<2x8x16xf32>
    %157 = arith.mulf %156, %155 : vector<2x8x16xf32>
    %158 = vector.broadcast %150 : vector<1x8x16xf32> to vector<2x8x16xf32>
    %159 = arith.addf %158, %157 : vector<2x8x16xf32>
    %160 = vector.shape_cast %159 : vector<2x8x16xf32> to vector<16x16xf32>
    %c2_130 = arith.constant 2 : index
    %c0_131 = arith.constant 0 : index
    %c0_132 = arith.constant 0 : index
    %161 = vector.load %arg8[%c2_130, %c0_131, %c0_132] : memref<3x16x16xf32, #tpu.memory_space<vmem>>, vector<1x16x16xf32>
    %162 = vector.shape_cast %161 : vector<1x16x16xf32> to vector<16x16xf32>
    %cst_133 = arith.constant dense<0.000000e+00> : vector<16x16xf32>
    %163 = tpu.matmul %160, %162, %cst_133 {dimension_numbers = #tpu.dot_dimension_numbers<[1], [0], [0], [1], [0, 0, 1, 1], [], []>} : vector<16x16xf32>, vector<16x16xf32>, vector<16x16xf32> -> vector<16x16xf32>
    %c2_134 = arith.constant 2 : index
    %c0_135 = arith.constant 0 : index
    %c0_136 = arith.constant 0 : index
    %164 = vector.load %arg1[%c2_134, %c0_135, %c0_136] : memref<3x16x16xf32, #tpu.memory_space<vmem>>, vector<1x16x16xf32>
    %165 = vector.shape_cast %164 : vector<1x16x16xf32> to vector<16x16xf32>
    %166 = arith.subf %163, %165 : vector<16x16xf32>
    %c2_137 = arith.constant 2 : index
    %167 = memref.load %arg11[%c2_137] : memref<3xf32, #tpu.memory_space<smem>>
    %168 = arith.mulf %166, %166 : vector<16x16xf32>
    %169 = vector.broadcast %167 : f32 to vector<16x16xf32>
    %170 = arith.mulf %169, %168 : vector<16x16xf32>
    %171 = arith.addf %149, %170 : vector<16x16xf32>
    %c0_138 = arith.constant 0 : index
    %172 = memref.load %arg11[%c0_138] : memref<3xf32, #tpu.memory_space<smem>>
    %c1_139 = arith.constant 1 : index
    %173 = memref.load %arg11[%c1_139] : memref<3xf32, #tpu.memory_space<smem>>
    %174 = arith.addf %172, %173 : f32
    %c2_140 = arith.constant 2 : index
    %175 = memref.load %arg11[%c2_140] : memref<3xf32, #tpu.memory_space<smem>>
    %176 = arith.addf %174, %175 : f32
    %177 = vector.shape_cast %171 : vector<16x16xf32> to vector<1x16x16xf32>
    %cst_141 = arith.constant dense<0.000000e+00> : vector<1xf32>
    %178 = vector.multi_reduction <add>, %177, %cst_141 [1, 2] : vector<1x16x16xf32> to vector<1xf32>
    %179 = vector.shape_cast %178 : vector<1xf32> to vector<1x1x1xf32>
    %180 = vector.extract %179[0, 0, 0] : f32 from vector<1x1x1xf32>
    %cst_142 = arith.constant 5.000000e-01 : f32
    %181 = arith.mulf %cst_142, %180 : f32
    %cst_143 = arith.constant 4.000000e+00 : f32
    %182 = arith.divf %181, %cst_143 : f32
    %cst_144 = arith.constant 58.8120651 : f32
    %183 = arith.mulf %cst_144, %176 : f32
    %184 = arith.addf %182, %183 : f32
    %cst_145 = arith.constant 2.400000e+01 : f32
    %185 = arith.divf %184, %cst_145 : f32
    %cst_146 = arith.constant 0.000000e+00 : f32
    %186 = vector.broadcast %cst_146 : f32 to vector<8x16xf32>
    %187 = arith.subf %44, %51 : vector<8x16xf32>
    %188 = arith.subf %15, %3 : vector<1x16xf32>
    %cst_147 = arith.constant 5.000000e-01 : f32
    %189 = vector.broadcast %cst_147 : f32 to vector<1x16xf32>
    %190 = arith.subf %188, %189 : vector<1x16xf32>
    %191 = arith.mulf %187, %187 : vector<8x16xf32>
    %192 = vector.broadcast %2 : vector<1x16xf32> to vector<8x16xf32>
    %193 = arith.addf %192, %191 : vector<8x16xf32>
    %194 = vector.broadcast %17 : vector<1x16xf32> to vector<8x16xf32>
    %195 = arith.mulf %193, %194 : vector<8x16xf32>
    %196 = vector.broadcast %190 : vector<1x16xf32> to vector<8x16xf32>
    %197 = arith.addf %196, %195 : vector<8x16xf32>
    %c0_148 = arith.constant 0 : index
    %198 = memref.load %arg11[%c0_148] : memref<3xf32, #tpu.memory_space<smem>>
    %c0_149 = arith.constant 0 : index
    %c1_150 = arith.constant 1 : index
    %199 = memref.load %arg9[%c0_149, %c1_150] : memref<3x3xf32, #tpu.memory_space<smem>>
    %200 = arith.mulf %198, %199 : f32
    %201 = vector.broadcast %200 : f32 to vector<8x16xf32>
    %202 = arith.mulf %201, %197 : vector<8x16xf32>
    %203 = arith.addf %186, %202 : vector<8x16xf32>
    %204 = arith.subf %44, %58 : vector<8x16xf32>
    %205 = arith.subf %27, %3 : vector<1x16xf32>
    %cst_151 = arith.constant 5.000000e-01 : f32
    %206 = vector.broadcast %cst_151 : f32 to vector<1x16xf32>
    %207 = arith.subf %205, %206 : vector<1x16xf32>
    %208 = arith.mulf %204, %204 : vector<8x16xf32>
    %209 = vector.broadcast %2 : vector<1x16xf32> to vector<8x16xf32>
    %210 = arith.addf %209, %208 : vector<8x16xf32>
    %211 = vector.broadcast %29 : vector<1x16xf32> to vector<8x16xf32>
    %212 = arith.mulf %210, %211 : vector<8x16xf32>
    %213 = vector.broadcast %207 : vector<1x16xf32> to vector<8x16xf32>
    %214 = arith.addf %213, %212 : vector<8x16xf32>
    %c0_152 = arith.constant 0 : index
    %215 = memref.load %arg11[%c0_152] : memref<3xf32, #tpu.memory_space<smem>>
    %c0_153 = arith.constant 0 : index
    %c2_154 = arith.constant 2 : index
    %216 = memref.load %arg9[%c0_153, %c2_154] : memref<3x3xf32, #tpu.memory_space<smem>>
    %217 = arith.mulf %215, %216 : f32
    %218 = vector.broadcast %217 : f32 to vector<8x16xf32>
    %219 = arith.mulf %218, %214 : vector<8x16xf32>
    %220 = arith.addf %203, %219 : vector<8x16xf32>
    %221 = arith.subf %74, %67 : vector<8x16xf32>
    %222 = arith.subf %3, %15 : vector<1x16xf32>
    %cst_155 = arith.constant 5.000000e-01 : f32
    %223 = vector.broadcast %cst_155 : f32 to vector<1x16xf32>
    %224 = arith.subf %222, %223 : vector<1x16xf32>
    %225 = arith.mulf %221, %221 : vector<8x16xf32>
    %226 = vector.broadcast %14 : vector<1x16xf32> to vector<8x16xf32>
    %227 = arith.addf %226, %225 : vector<8x16xf32>
    %228 = vector.broadcast %5 : vector<1x16xf32> to vector<8x16xf32>
    %229 = arith.mulf %227, %228 : vector<8x16xf32>
    %230 = vector.broadcast %224 : vector<1x16xf32> to vector<8x16xf32>
    %231 = arith.addf %230, %229 : vector<8x16xf32>
    %c1_156 = arith.constant 1 : index
    %232 = memref.load %arg11[%c1_156] : memref<3xf32, #tpu.memory_space<smem>>
    %c1_157 = arith.constant 1 : index
    %c0_158 = arith.constant 0 : index
    %233 = memref.load %arg9[%c1_157, %c0_158] : memref<3x3xf32, #tpu.memory_space<smem>>
    %234 = arith.mulf %232, %233 : f32
    %235 = vector.broadcast %234 : f32 to vector<8x16xf32>
    %236 = arith.mulf %235, %231 : vector<8x16xf32>
    %237 = arith.addf %220, %236 : vector<8x16xf32>
    %238 = arith.subf %74, %81 : vector<8x16xf32>
    %239 = arith.subf %27, %15 : vector<1x16xf32>
    %cst_159 = arith.constant 5.000000e-01 : f32
    %240 = vector.broadcast %cst_159 : f32 to vector<1x16xf32>
    %241 = arith.subf %239, %240 : vector<1x16xf32>
    %242 = arith.mulf %238, %238 : vector<8x16xf32>
    %243 = vector.broadcast %14 : vector<1x16xf32> to vector<8x16xf32>
    %244 = arith.addf %243, %242 : vector<8x16xf32>
    %245 = vector.broadcast %29 : vector<1x16xf32> to vector<8x16xf32>
    %246 = arith.mulf %244, %245 : vector<8x16xf32>
    %247 = vector.broadcast %241 : vector<1x16xf32> to vector<8x16xf32>
    %248 = arith.addf %247, %246 : vector<8x16xf32>
    %c1_160 = arith.constant 1 : index
    %249 = memref.load %arg11[%c1_160] : memref<3xf32, #tpu.memory_space<smem>>
    %c1_161 = arith.constant 1 : index
    %c2_162 = arith.constant 2 : index
    %250 = memref.load %arg9[%c1_161, %c2_162] : memref<3x3xf32, #tpu.memory_space<smem>>
    %251 = arith.mulf %249, %250 : f32
    %252 = vector.broadcast %251 : f32 to vector<8x16xf32>
    %253 = arith.mulf %252, %248 : vector<8x16xf32>
    %254 = arith.addf %237, %253 : vector<8x16xf32>
    %255 = arith.subf %104, %90 : vector<8x16xf32>
    %256 = arith.subf %3, %27 : vector<1x16xf32>
    %cst_163 = arith.constant 5.000000e-01 : f32
    %257 = vector.broadcast %cst_163 : f32 to vector<1x16xf32>
    %258 = arith.subf %256, %257 : vector<1x16xf32>
    %259 = arith.mulf %255, %255 : vector<8x16xf32>
    %260 = vector.broadcast %26 : vector<1x16xf32> to vector<8x16xf32>
    %261 = arith.addf %260, %259 : vector<8x16xf32>
    %262 = vector.broadcast %5 : vector<1x16xf32> to vector<8x16xf32>
    %263 = arith.mulf %261, %262 : vector<8x16xf32>
    %264 = vector.broadcast %258 : vector<1x16xf32> to vector<8x16xf32>
    %265 = arith.addf %264, %263 : vector<8x16xf32>
    %c2_164 = arith.constant 2 : index
    %266 = memref.load %arg11[%c2_164] : memref<3xf32, #tpu.memory_space<smem>>
    %c2_165 = arith.constant 2 : index
    %c0_166 = arith.constant 0 : index
    %267 = memref.load %arg9[%c2_165, %c0_166] : memref<3x3xf32, #tpu.memory_space<smem>>
    %268 = arith.mulf %266, %267 : f32
    %269 = vector.broadcast %268 : f32 to vector<8x16xf32>
    %270 = arith.mulf %269, %265 : vector<8x16xf32>
    %271 = arith.addf %254, %270 : vector<8x16xf32>
    %272 = arith.subf %104, %97 : vector<8x16xf32>
    %273 = arith.subf %15, %27 : vector<1x16xf32>
    %cst_167 = arith.constant 5.000000e-01 : f32
    %274 = vector.broadcast %cst_167 : f32 to vector<1x16xf32>
    %275 = arith.subf %273, %274 : vector<1x16xf32>
    %276 = arith.mulf %272, %272 : vector<8x16xf32>
    %277 = vector.broadcast %26 : vector<1x16xf32> to vector<8x16xf32>
    %278 = arith.addf %277, %276 : vector<8x16xf32>
    %279 = vector.broadcast %17 : vector<1x16xf32> to vector<8x16xf32>
    %280 = arith.mulf %278, %279 : vector<8x16xf32>
    %281 = vector.broadcast %275 : vector<1x16xf32> to vector<8x16xf32>
    %282 = arith.addf %281, %280 : vector<8x16xf32>
    %c2_168 = arith.constant 2 : index
    %283 = memref.load %arg11[%c2_168] : memref<3xf32, #tpu.memory_space<smem>>
    %c2_169 = arith.constant 2 : index
    %c1_170 = arith.constant 1 : index
    %284 = memref.load %arg9[%c2_169, %c1_170] : memref<3x3xf32, #tpu.memory_space<smem>>
    %285 = arith.mulf %283, %284 : f32
    %286 = vector.broadcast %285 : f32 to vector<8x16xf32>
    %287 = arith.mulf %286, %282 : vector<8x16xf32>
    %288 = arith.addf %271, %287 : vector<8x16xf32>
    %289 = vector.shape_cast %288 : vector<8x16xf32> to vector<1x8x16xf32>
    %cst_171 = arith.constant dense<0.000000e+00> : vector<1xf32>
    %290 = vector.multi_reduction <add>, %289, %cst_171 [1, 2] : vector<1x8x16xf32> to vector<1xf32>
    %291 = vector.shape_cast %290 : vector<1xf32> to vector<1x1x1xf32>
    %292 = vector.extract %291[0, 0, 0] : f32 from vector<1x1x1xf32>
    %cst_172 = arith.constant 3.000000e+00 : f32
    %293 = arith.divf %292, %cst_172 : f32
    %cst_173 = arith.constant 0.000000e+00 : f32
    %294 = vector.broadcast %cst_173 : f32 to vector<16x8xf32>
    %c0_174 = arith.constant 0 : index
    %c0_175 = arith.constant 0 : index
    %c0_176 = arith.constant 0 : index
    %295 = vector.load %arg5[%c0_174, %c0_175, %c0_176] : memref<3x16x8xf32, #tpu.memory_space<vmem>>, vector<1x16x8xf32>
    %296 = vector.shape_cast %295 : vector<1x16x8xf32> to vector<16x8xf32>
    %c1_177 = arith.constant 1 : index
    %c0_178 = arith.constant 0 : index
    %c0_179 = arith.constant 0 : index
    %297 = vector.load %arg5[%c1_177, %c0_178, %c0_179] : memref<3x16x8xf32, #tpu.memory_space<vmem>>, vector<1x16x8xf32>
    %298 = vector.shape_cast %297 : vector<1x16x8xf32> to vector<16x8xf32>
    %299 = arith.subf %296, %298 : vector<16x8xf32>
    %300 = arith.subf %21, %9 : vector<16x8xf32>
    %cst_180 = arith.constant 5.000000e-01 : f32
    %301 = vector.broadcast %cst_180 : f32 to vector<16x8xf32>
    %302 = arith.subf %300, %301 : vector<16x8xf32>
    %303 = arith.mulf %299, %299 : vector<16x8xf32>
    %304 = arith.addf %8, %303 : vector<16x8xf32>
    %305 = arith.mulf %304, %23 : vector<16x8xf32>
    %306 = arith.addf %302, %305 : vector<16x8xf32>
    %c0_181 = arith.constant 0 : index
    %c1_182 = arith.constant 1 : index
    %307 = memref.load %arg10[%c0_181, %c1_182] : memref<3x3xf32, #tpu.memory_space<smem>>
    %308 = vector.broadcast %307 : f32 to vector<16x8xf32>
    %309 = arith.mulf %308, %306 : vector<16x8xf32>
    %310 = arith.addf %294, %309 : vector<16x8xf32>
    %c2_183 = arith.constant 2 : index
    %c0_184 = arith.constant 0 : index
    %c0_185 = arith.constant 0 : index
    %311 = vector.load %arg5[%c2_183, %c0_184, %c0_185] : memref<3x16x8xf32, #tpu.memory_space<vmem>>, vector<1x16x8xf32>
    %312 = vector.shape_cast %311 : vector<1x16x8xf32> to vector<16x8xf32>
    %313 = arith.subf %296, %312 : vector<16x8xf32>
    %314 = arith.subf %33, %9 : vector<16x8xf32>
    %cst_186 = arith.constant 5.000000e-01 : f32
    %315 = vector.broadcast %cst_186 : f32 to vector<16x8xf32>
    %316 = arith.subf %314, %315 : vector<16x8xf32>
    %317 = arith.mulf %313, %313 : vector<16x8xf32>
    %318 = arith.addf %8, %317 : vector<16x8xf32>
    %319 = arith.mulf %318, %35 : vector<16x8xf32>
    %320 = arith.addf %316, %319 : vector<16x8xf32>
    %c0_187 = arith.constant 0 : index
    %c2_188 = arith.constant 2 : index
    %321 = memref.load %arg10[%c0_187, %c2_188] : memref<3x3xf32, #tpu.memory_space<smem>>
    %322 = vector.broadcast %321 : f32 to vector<16x8xf32>
    %323 = arith.mulf %322, %320 : vector<16x8xf32>
    %324 = arith.addf %310, %323 : vector<16x8xf32>
    %c1_189 = arith.constant 1 : index
    %c0_190 = arith.constant 0 : index
    %c0_191 = arith.constant 0 : index
    %325 = vector.load %arg5[%c1_189, %c0_190, %c0_191] : memref<3x16x8xf32, #tpu.memory_space<vmem>>, vector<1x16x8xf32>
    %326 = vector.shape_cast %325 : vector<1x16x8xf32> to vector<16x8xf32>
    %c0_192 = arith.constant 0 : index
    %c0_193 = arith.constant 0 : index
    %c0_194 = arith.constant 0 : index
    %327 = vector.load %arg5[%c0_192, %c0_193, %c0_194] : memref<3x16x8xf32, #tpu.memory_space<vmem>>, vector<1x16x8xf32>
    %328 = vector.shape_cast %327 : vector<1x16x8xf32> to vector<16x8xf32>
    %329 = arith.subf %326, %328 : vector<16x8xf32>
    %330 = arith.subf %9, %21 : vector<16x8xf32>
    %cst_195 = arith.constant 5.000000e-01 : f32
    %331 = vector.broadcast %cst_195 : f32 to vector<16x8xf32>
    %332 = arith.subf %330, %331 : vector<16x8xf32>
    %333 = arith.mulf %329, %329 : vector<16x8xf32>
    %334 = arith.addf %20, %333 : vector<16x8xf32>
    %335 = arith.mulf %334, %11 : vector<16x8xf32>
    %336 = arith.addf %332, %335 : vector<16x8xf32>
    %c1_196 = arith.constant 1 : index
    %c0_197 = arith.constant 0 : index
    %337 = memref.load %arg10[%c1_196, %c0_197] : memref<3x3xf32, #tpu.memory_space<smem>>
    %338 = vector.broadcast %337 : f32 to vector<16x8xf32>
    %339 = arith.mulf %338, %336 : vector<16x8xf32>
    %340 = arith.addf %324, %339 : vector<16x8xf32>
    %c2_198 = arith.constant 2 : index
    %c0_199 = arith.constant 0 : index
    %c0_200 = arith.constant 0 : index
    %341 = vector.load %arg5[%c2_198, %c0_199, %c0_200] : memref<3x16x8xf32, #tpu.memory_space<vmem>>, vector<1x16x8xf32>
    %342 = vector.shape_cast %341 : vector<1x16x8xf32> to vector<16x8xf32>
    %343 = arith.subf %326, %342 : vector<16x8xf32>
    %344 = arith.subf %33, %21 : vector<16x8xf32>
    %cst_201 = arith.constant 5.000000e-01 : f32
    %345 = vector.broadcast %cst_201 : f32 to vector<16x8xf32>
    %346 = arith.subf %344, %345 : vector<16x8xf32>
    %347 = arith.mulf %343, %343 : vector<16x8xf32>
    %348 = arith.addf %20, %347 : vector<16x8xf32>
    %349 = arith.mulf %348, %35 : vector<16x8xf32>
    %350 = arith.addf %346, %349 : vector<16x8xf32>
    %c1_202 = arith.constant 1 : index
    %c2_203 = arith.constant 2 : index
    %351 = memref.load %arg10[%c1_202, %c2_203] : memref<3x3xf32, #tpu.memory_space<smem>>
    %352 = vector.broadcast %351 : f32 to vector<16x8xf32>
    %353 = arith.mulf %352, %350 : vector<16x8xf32>
    %354 = arith.addf %340, %353 : vector<16x8xf32>
    %c2_204 = arith.constant 2 : index
    %c0_205 = arith.constant 0 : index
    %c0_206 = arith.constant 0 : index
    %355 = vector.load %arg5[%c2_204, %c0_205, %c0_206] : memref<3x16x8xf32, #tpu.memory_space<vmem>>, vector<1x16x8xf32>
    %356 = vector.shape_cast %355 : vector<1x16x8xf32> to vector<16x8xf32>
    %c0_207 = arith.constant 0 : index
    %c0_208 = arith.constant 0 : index
    %c0_209 = arith.constant 0 : index
    %357 = vector.load %arg5[%c0_207, %c0_208, %c0_209] : memref<3x16x8xf32, #tpu.memory_space<vmem>>, vector<1x16x8xf32>
    %358 = vector.shape_cast %357 : vector<1x16x8xf32> to vector<16x8xf32>
    %359 = arith.subf %356, %358 : vector<16x8xf32>
    %360 = arith.subf %9, %33 : vector<16x8xf32>
    %cst_210 = arith.constant 5.000000e-01 : f32
    %361 = vector.broadcast %cst_210 : f32 to vector<16x8xf32>
    %362 = arith.subf %360, %361 : vector<16x8xf32>
    %363 = arith.mulf %359, %359 : vector<16x8xf32>
    %364 = arith.addf %32, %363 : vector<16x8xf32>
    %365 = arith.mulf %364, %11 : vector<16x8xf32>
    %366 = arith.addf %362, %365 : vector<16x8xf32>
    %c2_211 = arith.constant 2 : index
    %c0_212 = arith.constant 0 : index
    %367 = memref.load %arg10[%c2_211, %c0_212] : memref<3x3xf32, #tpu.memory_space<smem>>
    %368 = vector.broadcast %367 : f32 to vector<16x8xf32>
    %369 = arith.mulf %368, %366 : vector<16x8xf32>
    %370 = arith.addf %354, %369 : vector<16x8xf32>
    %c1_213 = arith.constant 1 : index
    %c0_214 = arith.constant 0 : index
    %c0_215 = arith.constant 0 : index
    %371 = vector.load %arg5[%c1_213, %c0_214, %c0_215] : memref<3x16x8xf32, #tpu.memory_space<vmem>>, vector<1x16x8xf32>
    %372 = vector.shape_cast %371 : vector<1x16x8xf32> to vector<16x8xf32>
    %373 = arith.subf %356, %372 : vector<16x8xf32>
    %374 = arith.subf %21, %33 : vector<16x8xf32>
    %cst_216 = arith.constant 5.000000e-01 : f32
    %375 = vector.broadcast %cst_216 : f32 to vector<16x8xf32>
    %376 = arith.subf %374, %375 : vector<16x8xf32>
    %377 = arith.mulf %373, %373 : vector<16x8xf32>
    %378 = arith.addf %32, %377 : vector<16x8xf32>
    %379 = arith.mulf %378, %23 : vector<16x8xf32>
    %380 = arith.addf %376, %379 : vector<16x8xf32>
    %c2_217 = arith.constant 2 : index
    %c1_218 = arith.constant 1 : index
    %381 = memref.load %arg10[%c2_217, %c1_218] : memref<3x3xf32, #tpu.memory_space<smem>>
    %382 = vector.broadcast %381 : f32 to vector<16x8xf32>
    %383 = arith.mulf %382, %380 : vector<16x8xf32>
    %384 = arith.addf %370, %383 : vector<16x8xf32>
    %385 = vector.shape_cast %384 : vector<16x8xf32> to vector<1x16x8xf32>
    %cst_219 = arith.constant dense<0.000000e+00> : vector<1xf32>
    %386 = vector.multi_reduction <add>, %385, %cst_219 [1, 2] : vector<1x16x8xf32> to vector<1xf32>
    %387 = vector.shape_cast %386 : vector<1xf32> to vector<1x1x1xf32>
    %388 = vector.extract %387[0, 0, 0] : f32 from vector<1x1x1xf32>
    %cst_220 = arith.constant 3.000000e+00 : f32
    %389 = arith.divf %388, %cst_220 : f32
    %390 = arith.addf %185, %293 : f32
    %391 = arith.addf %390, %389 : f32
    %c0_221 = arith.constant 0 : index
    %392 = memref.load %arg12[%c0_221] : memref<4xf32, #tpu.memory_space<smem>>
    memref.store %391, %arg12[%c0_221] : memref<4xf32, #tpu.memory_space<smem>>
    %c1_222 = arith.constant 1 : index
    %393 = memref.load %arg12[%c1_222] : memref<4xf32, #tpu.memory_space<smem>>
    memref.store %185, %arg12[%c1_222] : memref<4xf32, #tpu.memory_space<smem>>
    %c2_223 = arith.constant 2 : index
    %394 = memref.load %arg12[%c2_223] : memref<4xf32, #tpu.memory_space<smem>>
    memref.store %293, %arg12[%c2_223] : memref<4xf32, #tpu.memory_space<smem>>
    %c3 = arith.constant 3 : index
    %395 = memref.load %arg12[%c3] : memref<4xf32, #tpu.memory_space<smem>>
    memref.store %389, %arg12[%c3] : memref<4xf32, #tpu.memory_space<smem>>
    return
  }
}

</mosaic_0001>

<bundles_post_ra>
// kernel: tile.9
= control target key start
LH: loop header
LB: loop body
LE: loop exit
PB: predicated region body
PF: predicated region fallthrough
CT: control target
= control target key end

     0   :  { %vm242_vm0 = vcmask 1047556   ;;  %s460_s10 = smov 8   ;;  %vm244_vm1 = vcmask 64512   ;;  %vm299_vm2 = vcmask 130112   ;;  %s675_s0 = inlined_call_operand.vmem [shape: f32[3,2,8,2,8], index: 0, kind: input, shape index: {}]   ;;  %s676_s1 = inlined_call_operand.vmem [shape: f32[3,16,16], index: 1, kind: output, shape index: {}]  }
   0x1   :  { %v442_v0 = vld [vmem:[%s675_s0 + $0xe] sm:$0x3]  ;;  %v443_v1 = vld [vmem:[%s675_s0 + $0xc] sm:$0x3]  ;;  %v444_v2 = vld [vmem:[%s675_s0 + $0xa] sm:$0x3] }
   0x2   :  { %208 = vst [vmem:[#allocation0 + $0x38] sm:$0x3] %v442_v0  ;;  %213 = vst [vmem:[#allocation0 + $0x30] sm:$0x3] %v443_v1  ;;  %v445_v3 = vld [vmem:[%s675_s0 + $0x8] sm:$0x3] }
   0x3   :  { %218 = vst [vmem:[#allocation0 + $0x28] sm:$0x3] %v444_v2  ;;  %v446_v4 = vld [vmem:[%s675_s0 + $0x6] sm:$0x3]  ;;  %v447_v5 = vld [vmem:[%s675_s0 + $0x4] sm:$0x3] }
   0x4   :  { %223 = vst [vmem:[#allocation0 + $0x20] sm:$0x3] %v445_v3  ;;  %228 = vst [vmem:[#allocation0 + $0x18] sm:$0x3] %v446_v4  ;;  %v448_v6 = vld [vmem:[%s675_s0 + $0x2] sm:$0x3] }
   0x5   :  { %233 = vst [vmem:[#allocation0 + $0x10] sm:$0x3] %v447_v5  ;;  %v238_v7 = vld [vmem:[%s675_s0] sm:$0x3]  ;;  %237 = vst [vmem:[#allocation0 + $0x8] sm:$0x3] %v448_v6 }
   0x6   :  { %239 = vst [vmem:[#allocation0] sm:$0x3] %v238_v7  ;;  %v434_v8 = vld [vmem:[%s675_s0 + $0x1e] sm:$0x3]  ;;  %v435_v9 = vld [vmem:[%s675_s0 + $0x1c] sm:$0x3] }
   0x7   :  { %v436_v10 = vld [vmem:[%s675_s0 + $0x1a] sm:$0x3]  ;;  %168 = vst [vmem:[#allocation0 + $0x78] sm:$0x3] %v434_v8  ;;  %173 = vst [vmem:[#allocation0 + $0x70] sm:$0x3] %v435_v9 }
   0x8   :  { %178 = vst [vmem:[#allocation0 + $0x68] sm:$0x3] %v436_v10  ;;  %v437_v11 = vld [vmem:[%s675_s0 + $0x18] sm:$0x3]  ;;  %v438_v12 = vld [vmem:[%s675_s0 + $0x16] sm:$0x3] }
   0x9   :  { %v439_v13 = vld [vmem:[%s675_s0 + $0x14] sm:$0x3]  ;;  %183 = vst [vmem:[#allocation0 + $0x60] sm:$0x3] %v437_v11  ;;  %188 = vst [vmem:[#allocation0 + $0x58] sm:$0x3] %v438_v12 }
   0xa   :  { %193 = vst [vmem:[#allocation0 + $0x50] sm:$0x3] %v439_v13  ;;  %v440_v14 = vld [vmem:[%s675_s0 + $0x12] sm:$0x3]  ;;  %v441_v15 = vld [vmem:[%s675_s0 + $0x10] sm:$0x3] }
   0xb   :  { %v410_v16 = vld [vmem:[%s675_s0 + $0x4e] sm:$0x3]  ;;  %198 = vst [vmem:[#allocation0 + $0x48] sm:$0x3] %v440_v14  ;;  %203 = vst [vmem:[#allocation0 + $0x40] sm:$0x3] %v441_v15 }
   0xc   :  { %48 = vst [vmem:[#allocation0 + $0x138] sm:$0x3] %v410_v16  ;;  %v411_v17 = vld [vmem:[%s675_s0 + $0x4c] sm:$0x3]  ;;  %v412_v18 = vld [vmem:[%s675_s0 + $0x4a] sm:$0x3] }
   0xd   :  { %v413_v19 = vld [vmem:[%s675_s0 + $0x48] sm:$0x3]  ;;  %53 = vst [vmem:[#allocation0 + $0x130] sm:$0x3] %v411_v17  ;;  %58 = vst [vmem:[#allocation0 + $0x128] sm:$0x3] %v412_v18 }
   0xe   :  { %63 = vst [vmem:[#allocation0 + $0x120] sm:$0x3] %v413_v19  ;;  %v414_v20 = vld [vmem:[%s675_s0 + $0x46] sm:$0x3]  ;;  %v415_v21 = vld [vmem:[%s675_s0 + $0x44] sm:$0x3] }
   0xf   :  { %v416_v22 = vld [vmem:[%s675_s0 + $0x42] sm:$0x3]  ;;  %68 = vst [vmem:[#allocation0 + $0x118] sm:$0x3] %v414_v20  ;;  %73 = vst [vmem:[#allocation0 + $0x110] sm:$0x3] %v415_v21 }
  0x10   :  { %78 = vst [vmem:[#allocation0 + $0x108] sm:$0x3] %v416_v22  ;;  %v417_v23 = vld [vmem:[%s675_s0 + $0x40] sm:$0x3]  ;;  %v402_v24 = vld [vmem:[%s675_s0 + $0x5e] sm:$0x3] }
  0x11   :  { %v403_v25 = vld [vmem:[%s675_s0 + $0x5c] sm:$0x3]  ;;  %v294_v26 = vld [vmem:[#allocation0 + $0x1] ss:$8 sm:$0xf0]  }
  0x12   :  { %83 = vst [vmem:[#allocation0 + $0x100] sm:$0x3] %v417_v23  ;;  %8 = vst [vmem:[#allocation0 + $0x178] sm:$0x3] %v402_v24  ;;  %v404_v27 = vld [vmem:[%s675_s0 + $0x5a] sm:$0x3] }
  0x13   :  { %13 = vst [vmem:[#allocation0 + $0x170] sm:$0x3] %v403_v25  ;;  %v292_v28 = vld [vmem:[#allocation0 + $0x1] ss:$8 sm:$0xf]  }
  0x14   :  { %18 = vst [vmem:[#allocation0 + $0x168] sm:$0x3] %v404_v27  ;;  %v405_v29 = vld [vmem:[%s675_s0 + $0x58] sm:$0x3]  ;;  %v296_v30 = vsel %vm242_vm0, %v294_v26, %v292_v28  ;;  %v406_v31 = vld [vmem:[%s675_s0 + $0x56] sm:$0x3] }
  0x15   :  { %23 = vst [vmem:[#allocation0 + $0x160] sm:$0x3] %v405_v29  ;;  %v407_v32 = vld [vmem:[%s675_s0 + $0x54] sm:$0x3]  ;;  %v408_v33 = vld [vmem:[%s675_s0 + $0x52] sm:$0x3]  ;;  %297 = vrot.lane.b32.xlu0 %v296_v30, %s460_s10 }
  0x16   :  { %v315_v34 = vld [vmem:[#allocation0 + $0x41] ss:$8 sm:$0xf0]   ;;  %28 = vst [vmem:[#allocation0 + $0x158] sm:$0x3] %v406_v31 }
  0x17   :  { %33 = vst [vmem:[#allocation0 + $0x150] sm:$0x3] %v407_v32  ;;  %38 = vst [vmem:[#allocation0 + $0x148] sm:$0x3] %v408_v33  ;;  %v409_v35 = vld [vmem:[%s675_s0 + $0x50] sm:$0x3] }
  0x18   :  { %v313_v36 = vld [vmem:[#allocation0 + $0x41] ss:$8 sm:$0xf]   ;;  %43 = vst [vmem:[#allocation0 + $0x140] sm:$0x3] %v409_v35 }
  0x19   :  { %v426_v37 = vld [vmem:[%s675_s0 + $0x2e] sm:$0x3]  ;;  %v317_v38 = vsel %vm242_vm0, %v315_v34, %v313_v36  ;;  %v304_v39 = vld [vmem:[#allocation0 + $0x101] ss:$8 sm:$0xf0]  }
  0x1a   :  { %128 = vst [vmem:[#allocation0 + $0xb8] sm:$0x3] %v426_v37  ;;  %v427_v40 = vld [vmem:[%s675_s0 + $0x2c] sm:$0x3]  ;;  %318 = vrot.lane.b32.xlu1 %v317_v38, %s460_s10  ;;  %v428_v41 = vld [vmem:[%s675_s0 + $0x2a] sm:$0x3] }
  0x1b   :  { %133 = vst [vmem:[#allocation0 + $0xb0] sm:$0x3] %v427_v40  ;;  %v429_v42 = vld [vmem:[%s675_s0 + $0x28] sm:$0x3]  ;;  %v430_v43 = vld [vmem:[%s675_s0 + $0x26] sm:$0x3] }
  0x1c   :  { %v302_v44 = vld [vmem:[#allocation0 + $0x101] ss:$8 sm:$0xf]   ;;  %138 = vst [vmem:[#allocation0 + $0xa8] sm:$0x3] %v428_v41 }
  0x1d   :  { %143 = vst [vmem:[#allocation0 + $0xa0] sm:$0x3] %v429_v42  ;;  %148 = vst [vmem:[#allocation0 + $0x98] sm:$0x3] %v430_v43  ;;  %v431_v45 = vld [vmem:[%s675_s0 + $0x24] sm:$0x3]  ;;  %v306_v46 = vsel %vm242_vm0, %v304_v39, %v302_v44 }
  0x1e   :  { %153 = vst [vmem:[#allocation0 + $0x90] sm:$0x3] %v431_v45  ;;  %v432_v47 = vld [vmem:[%s675_s0 + $0x22] sm:$0x3]  ;;  %v433_v48 = vld [vmem:[%s675_s0 + $0x20] sm:$0x3]  ;;  %307 = vrot.lane.b32.xlu0 %v306_v46, %s460_s10 }
  0x1f   :  { %v418_v49 = vld [vmem:[%s675_s0 + $0x3e] sm:$0x3]  ;;  %v326_v50 = vld [vmem:[#allocation0 + $0x141] ss:$8 sm:$0xf0]  }
  0x20   :  { %158 = vst [vmem:[#allocation0 + $0x88] sm:$0x3] %v432_v47  ;;  %163 = vst [vmem:[#allocation0 + $0x80] sm:$0x3] %v433_v48  ;;  %v419_v51 = vld [vmem:[%s675_s0 + $0x3c] sm:$0x3] }
  0x21   :  { %88 = vst [vmem:[#allocation0 + $0xf8] sm:$0x3] %v418_v49  ;;  %93 = vst [vmem:[#allocation0 + $0xf0] sm:$0x3] %v419_v51  ;;  %v420_v52 = vld [vmem:[%s675_s0 + $0x3a] sm:$0x3] }
  0x22   :  { %v421_v53 = vld [vmem:[%s675_s0 + $0x38] sm:$0x3]  ;;  %v422_v54 = vld [vmem:[%s675_s0 + $0x36] sm:$0x3]  ;;  %98 = vst [vmem:[#allocation0 + $0xe8] sm:$0x3] %v420_v52 }
  0x23   :  { %v324_v55 = vld [vmem:[#allocation0 + $0x141] ss:$8 sm:$0xf]   ;;  %103 = vst [vmem:[#allocation0 + $0xe0] sm:$0x3] %v421_v53 }
  0x24   :  { %108 = vst [vmem:[#allocation0 + $0xd8] sm:$0x3] %v422_v54  ;;  %v423_v56 = vld [vmem:[%s675_s0 + $0x34] sm:$0x3]  ;;  %v328_v57 = vsel %vm242_vm0, %v326_v50, %v324_v55  ;;  %v424_v58 = vld [vmem:[%s675_s0 + $0x32] sm:$0x3] }
  0x25   :  { %113 = vst [vmem:[#allocation0 + $0xd0] sm:$0x3] %v423_v56  ;;  %v425_v59 = vld [vmem:[%s675_s0 + $0x30] sm:$0x3]  ;;  %329 = vrot.lane.b32.xlu1 %v328_v57, %s460_s10  ;;  %118 = vst [vmem:[#allocation0 + $0xc8] sm:$0x3] %v424_v58 }
  0x26   :  { %123 = vst [vmem:[#allocation0 + $0xc0] sm:$0x3] %v425_v59  ;;  %v240_v60 = vld [vmem:[#allocation0] ss:$8 sm:$0xf]  }
  0x27   :  { %v241_v61 = vld [vmem:[#allocation0] ss:$8 sm:$0xf0]   ;;  %v337_v62 = vld [vmem:[#allocation0 + $0x81] ss:$8 sm:$0xf0]  }
  0x28   :  { %v243_v63 = vsel %vm242_vm0, %v241_v61, %v240_v60  ;;  %v247_v0 = vld [vmem:[#allocation0 + $0x40] ss:$8 sm:$0xf]   ;;  %v335_v3 = vld [vmem:[#allocation0 + $0x81] ss:$8 sm:$0xf]  }
  0x29   :  { %245 = vst.msk [vmem:[%s676_s1] sm:$0xff] %vm244_vm1, %v243_v63   ;;  %v249_v1 = vld [vmem:[#allocation0 + $0x40] ss:$8 sm:$0xf0]   ;;  %v339_v6 = vsel %vm242_vm0, %v337_v62, %v335_v3 }
  0x2a   :  { %v274_v2 = vld [vmem:[#allocation0 + $0x100] ss:$8 sm:$0xf]   ;;  %v251_v4 = vsel %vm242_vm0, %v249_v1, %v247_v0  ;;  %340 = vrot.lane.b32.xlu0 %v339_v6, %s460_s10  ;;  %v348_v10 = vld [vmem:[#allocation0 + $0xc1] ss:$8 sm:$0xf0]  }
  0x2b   :  { %v276_v5 = vld [vmem:[#allocation0 + $0x100] ss:$8 sm:$0xf0]   ;;  %449 = vst.msk [vmem:[%s676_s1 + $0x8] sm:$0xff] %vm244_vm1, %v251_v4  }
  0x2c   :  { %v278_v7 = vsel %vm242_vm0, %v276_v5, %v274_v2  ;;  %v283_v8 = vld [vmem:[#allocation0 + $0x140] ss:$8 sm:$0xf]  }
  0x2d   :  { %v285_v9 = vld [vmem:[#allocation0 + $0x140] ss:$8 sm:$0xf0]   ;;  %452 = vst.msk [vmem:[%s676_s1 + $0x20] sm:$0xff] %vm244_vm1, %v278_v7  }
  0x2e   :  { %v287_v11 = vsel %vm242_vm0, %v285_v9, %v283_v8  ;;  %v256_v12 = vld [vmem:[#allocation0 + $0x80] ss:$8 sm:$0xf]   ;;  %v346_v15 = vld [vmem:[#allocation0 + $0xc1] ss:$8 sm:$0xf]  }
  0x2f   :  { %453 = vst.msk [vmem:[%s676_s1 + $0x28] sm:$0xff] %vm244_vm1, %v287_v11   ;;  %v258_v13 = vld [vmem:[#allocation0 + $0x80] ss:$8 sm:$0xf0]   ;;  %v350_v18 = vsel %vm242_vm0, %v348_v10, %v346_v15 }
  0x30   :  { %v267_v14 = vld [vmem:[#allocation0 + $0xc0] ss:$8 sm:$0xf0]   ;;  %v260_v16 = vsel %vm242_vm0, %v258_v13, %v256_v12  ;;  %351 = vrot.lane.b32.xlu1 %v350_v18, %s460_s10 }
  0x31   :  { %v265_v17 = vld [vmem:[#allocation0 + $0xc0] ss:$8 sm:$0xf]   ;;  %450 = vst.msk [vmem:[%s676_s1 + $0x10] sm:$0xff] %vm244_vm1, %v260_v16  }
  0x32   :  { %v269_v19 = vsel %vm242_vm0, %v267_v14, %v265_v17 }
  0x33   :  { %451 = vst.msk [vmem:[%s676_s1 + $0x18] sm:$0xff] %vm244_vm1, %v269_v19  }
  0x87   :  { %v298_v20 = vpop.permute.xlu0 %297  }
  0x88   :  { %300 = vst.msk [vmem:[%s676_s1] sm:$0xff] %vm299_vm2, %v298_v20  }
  0x8c   :  { %v319_v21 = vpop.permute.xlu1 %318  }
  0x8d   :  { %455 = vst.msk [vmem:[%s676_s1 + $0x8] sm:$0xff] %vm299_vm2, %v319_v21  }
  0x90   :  { %v308_v22 = vpop.permute.xlu0 %307  }
  0x91   :  { %454 = vst.msk [vmem:[%s676_s1 + $0x20] sm:$0xff] %vm299_vm2, %v308_v22  }
  0x97   :  { %v330_v23 = vpop.permute.xlu1 %329  }
  0x98   :  { %456 = vst.msk [vmem:[%s676_s1 + $0x28] sm:$0xff] %vm299_vm2, %v330_v23  }
  0x9c   :  { %v341_v24 = vpop.permute.xlu0 %340  }
  0x9d   :  { %457 = vst.msk [vmem:[%s676_s1 + $0x10] sm:$0xff] %vm299_vm2, %v341_v24  }
  0xa2   :  { %v352_v25 = vpop.permute.xlu1 %351  }
  0xa3   :  { %458 = vst.msk [vmem:[%s676_s1 + $0x18] sm:$0xff] %vm299_vm2, %v352_v25  }

// kernel: multitask_elbo.3
= control target key start
LH: loop header
LB: loop body
LE: loop exit
PB: predicated region body
PF: predicated region fallthrough
CT: control target
= control target key end

     0   :  { %17 = vsyncpa [#allocation3], 0  ;;  %s2475_s0 = inlined_call_operand.vmem [shape: f32[3,8,32], index: 0, kind: input, shape index: {}]   ;;  %s2476_s1 = inlined_call_operand.vmem [shape: f32[3,16,16], index: 1, kind: input, shape index: {}]   ;;  %s2477_s2 = inlined_call_operand.vmem [shape: f32[3,32,16], index: 2, kind: input, shape index: {}]   ;;  %s2478_s3 = inlined_call_operand.vmem [shape: f32[3,1,16], index: 3, kind: input, shape index: {}]   ;;  %s2479_s4 = inlined_call_operand.vmem [shape: f32[3,1,16], index: 4, kind: input, shape index: {}]   ;;  %s2480_s5 = inlined_call_operand.vmem [shape: f32[3,16,8], index: 5, kind: input, shape index: {}]   ;;  %s2481_s6 = inlined_call_operand.vmem [shape: f32[3,16,8], index: 6, kind: input, shape index: {}]   ;;  %s2482_s7 = inlined_call_operand.vmem [shape: f32[3,2,8,16], index: 7, kind: input, shape index: {}]   ;;  %s2483_s8 = inlined_call_operand.vmem [shape: f32[3,16,16], index: 8, kind: input, shape index: {}]   ;;  %s2484_s9 = inlined_call_operand.vmem [shape: f32[3,3], index: 9, kind: input, shape index: {}]   ;;  %s2485_s10 = inlined_call_operand.vmem [shape: f32[3,3], index: 10, kind: input, shape index: {}]   ;;  %s2486_s11 = inlined_call_operand.vmem [shape: f32[3], index: 11, kind: input, shape index: {}]   ;;  %s2487_s12 = inlined_call_operand.vmem [shape: f32[4], index: 12, kind: output, shape index: {}]  }
   0x1   :  { %18 = vsyncpa [#allocation6], 0  ;;  %s54_s23 = sshll.u32 %s2485_s10, 4  ;;  %s55_s23 = int_to_ptr.vmem [resolvable:$true] %s54_s23 }
   0x2   :  { %19 = vsyncpa [#allocation4], 0  ;;  %s44_s26 = sshll.u32 %s2484_s9, 4  ;;  %s1873_s27 = scalar_lea.vmem %s55_s23, 64  ;;  %s45_s26 = int_to_ptr.vmem [resolvable:$true] %s44_s26 }
   0x3   :  { %p1874_p0 = scmp.ne.s32.totalorder %s55_s23, %s1873_s27  ;;  %p1878_p1 = scmp.lt.s32.totalorder %s55_s23, %s55_s23 }
   0x4   :  { %p1879_p2 = scmp.lt.s32.totalorder %s1873_s27, %s1873_s27 }
   0x6   :  { %p1880_p3 = por %p1879_p2, %p1878_p1 }
   0x8   :  { %p1881_p4 = pnand %p1880_p3, %p1874_p0 }
   0xa   :  { %1884 = shalt.err (!%p1881_p4)
}
   0xb   :  { %s1927_s28 = smov [#allocation5]   ;;  %s1885_s29 = scalar_lea.vmem %s45_s26, 64 }
   0xc   :  { %57 = dma.vmem_to_smem %s55_s23, 64, %s1927_s28, [#allocation6]  }
   0xd   :  { %p1886_p5 = scmp.ne.s32.totalorder %s45_s26, %s1885_s29  ;;  %p1890_p6 = scmp.lt.s32.totalorder %s45_s26, %s45_s26 }
   0xe   :  { %p1891_p7 = scmp.lt.s32.totalorder %s1885_s29, %s1885_s29 }
  0x10   :  { %p1892_p8 = por %p1891_p7, %p1890_p6 }
  0x12   :  { %p1893_p9 = pnand %p1892_p8, %p1886_p5 }
  0x14   :  { %1896 = shalt.err (!%p1893_p9)
}
  0x15   :  { %s1928_s10 = smov [#allocation2]   ;;  %s64_s13 = sshll.u32 %s2486_s11, 4  ;;  %s65_s13 = int_to_ptr.vmem [resolvable:$true] %s64_s13 }
  0x16   :  { %47 = dma.vmem_to_smem %s45_s26, 64, %s1928_s10, [#allocation3]  }
  0x17   :  { %s1897_s14 = scalar_lea.vmem %s65_s13, 16  ;;  %p1902_p11 = scmp.lt.s32.totalorder %s65_s13, %s65_s13 }
  0x18   :  { %p1898_p10 = scmp.ne.s32.totalorder %s65_s13, %s1897_s14  ;;  %p1903_p12 = scmp.lt.s32.totalorder %s1897_s14, %s1897_s14 }
  0x1a   :  { %p1904_p13 = por %p1903_p12, %p1902_p11 }
  0x1c   :  { %p1905_p0 = pnand %p1904_p13, %p1898_p10 }
  0x1e   :  { %1908 = shalt.err (!%p1905_p0)
}
  0x1f   :  { %s1929_s15 = smov [#allocation7]  }
  0x20   :  { %67 = dma.vmem_to_smem %s65_s13, 16, %s1929_s15, [#allocation6]  }
  0x21   :  { %1921 = dma.done.wait [#allocation3], 64  }
  0x22   :  { %1922 = vsyncadd [#allocation3], 4294967232 }
  0x23   :  { %1923 = dma.done.wait [#allocation6], 80  }
  0x24   :  { %1924 = vsyncadd [#allocation6], 4294967216 }
  0x25   :  { %77 = sfence }
  0x26   :  { %v137_v0 = vld [vmem:[%s2477_s2] sm:$0xff]  ;;  %v138_v1 = vld [vmem:[%s2477_s2 + $0x8] sm:$0xff]  ;;  %v1930_v3 = vmov 0.0|0.0   ;;  %v139_v6 = vld [vmem:[%s2477_s2 + $0x10] sm:$0xff]  ;;  %vm1931_vm0 = vmmov 0   ;;  %v1932_v11 = vmov 0.0   ;;  %v821_v26 = vlaneseq }
  0x27   :  { %v1505_v2 = vld [vmem:[%s2477_s2 + $0x20] sm:$0xff]  ;;  %1758 = vmatprep.subr.bf16.mxu0 %v1930_v3  ;;  %v1759_v4 = vpack.c.bf16 %v138_v1, %v137_v0  ;;  %1764 = vmatprep.subr.bf16.mxu1 %v1930_v3  ;;  %v1506_v5 = vld [vmem:[%s2477_s2 + $0x28] sm:$0xff]  ;;  %v140_v7 = vld [vmem:[%s2477_s2 + $0x18] sm:$0xff]  ;;  %vm148_vm1 = vcmask 261120   ;;  %vm832_vm2 = vcmask 130048   ;;  %s2189_s24 = sld [smem:[#allocation7]] }
  0x28   :  { %v1765_v8 = vpack.c.bf16 %v1506_v5, %v1505_v2  ;;  %v1507_v9 = vld [vmem:[%s2477_s2 + $0x30] sm:$0xff]  ;;  %v1508_v10 = vld [vmem:[%s2477_s2 + $0x38] sm:$0xff]  ;;  %1646 = vmatprep.mubr.msk.f32.mxu0 %vm1931_vm0, %v1932_v11  ;;  %1657 = vmatprep.mubr.msk.f32.mxu1 %vm1931_vm0, %v1932_v11  ;;  %v1762_v12 = vpack.c.bf16 %v140_v7, %v139_v6  ;;  %v1512_v14 = vld [vmem:[%s2477_s2 + $0x40] sm:$0xff]  ;;  %v822_v34 = vshrl.u32 %v821_v26, 7  ;;  %s2195_s25 = sld [smem:[#allocation2 + $0x2]]  ;;  %s2221_s30 = sld [smem:[#allocation7 + $0x1]] }
  0x29   :  { %1760 = vmatpush3.bf16.msra.mxu0 %v1759_v4  ;;  %v1768_v13 = vpack.c.bf16 %v1508_v10, %v1507_v9  ;;  %v1513_v15 = vld [vmem:[%s2477_s2 + $0x48] sm:$0xff]  ;;  %v136_v16 = vld [vmem:[%s2475_s0] sm:$0xff]  ;;  %v1514_v18 = vld [vmem:[%s2477_s2 + $0x50] sm:$0xff]  ;;  %s2223_s13 = sld [smem:[#allocation2 + $0x80]]  ;;  %s2225_s14 = sld [smem:[#allocation2 + $0x82]]  ;;  %vm1454_vm3 = vcmask 64512  }
  0x2a   :  { %1766 = vmatpush3.bf16.msra.mxu1 %v1765_v8  ;;  %1761 = vmatprep.subr.bf16.mxu0 %v1930_v3  ;;  %v1771_v17 = vpack.c.bf16 %v1513_v15, %v1512_v14  ;;  %v1515_v19 = vld [vmem:[%s2477_s2 + $0x58] sm:$0xff]  ;;  %v1519_v21 = vld [vmem:[%s2475_s0 + $0x8] sm:$0xff]  ;;  %v1523_v22 = vld [vmem:[%s2475_s0 + $0x10] sm:$0xff]  ;;  %v2117_v38 = vsub.s32 0, %v822_v34  ;;  %s2192_s0 = sld [smem:[#allocation2 + $0x1]]  ;;  %s2259_s19 = sld [smem:[#allocation7 + $0x2]] }
  0x2b   :  { %1767 = vmatprep.subr.bf16.mxu1 %v1930_v3  ;;  %v1774_v20 = vpack.c.bf16 %v1515_v19, %v1514_v18  ;;  %v2092_v23 = vld [vmem:[%s2479_s4] sm:$0x1]  ;;  %v2098_v24 = vld [vmem:[%s2479_s4 + $0x1] sm:$0x1]  ;;  %v831_v29 = vld [vmem:[%s2483_s8 + $0x8] sm:$0xff]  ;;  %s1556_s2 = sld [smem:[#allocation2 + $0x100]] }
  0x2c   :  { %1837 = vlog2.f32 %v2092_v23  ;;  %v98_v25 = vmul.f32 %v2098_v24, %v2098_v24  ;;  %v830_v28 = vld [vmem:[%s2483_s8] sm:$0xff]  ;;  %v1531_v51 = vld [vmem:[%s2483_s8 + $0x10] sm:$0xff]  ;;  %v1532_v52 = vld [vmem:[%s2483_s8 + $0x18] sm:$0xff]  ;;  %s1558_s20 = sld [smem:[#allocation2 + $0x101]]  ;;  %s2365_s22 = sld [smem:[#allocation5 + $0x80]] }
  0x2d   :  { %1763 = vmatpush3.bf16.msra.mxu0 %v1762_v12  ;;  %1839 = vlog2.f32 %v2098_v24  ;;  %v2112_v30 = vld [vmem:[%s2479_s4 + $0x2] sm:$0x1]  ;;  %v1812_v31 = vpack.c.bf16 %v831_v29, %v830_v28  ;;  %v1816_v53 = vpack.c.bf16 %v1532_v52, %v1531_v51  ;;  %v1541_v63 = vld [vmem:[%s2483_s8 + $0x28] sm:$0xff]  ;;  %s2387_s23 = sld [smem:[#allocation5 + $0x82]] }
  0x2e   :  { %1769 = vmatpush3.bf16.msra.mxu1 %v1768_v13  ;;  %1770 = vmatprep.subr.bf16.mxu0 %v1930_v3  ;;  %1841 = vrcp.f32 %v98_v25  ;;  %v118_v32 = vmul.f32 %v2112_v30, %v2112_v30  ;;  %v2140_v55 = vrot.slane %v98_v25, %v2117_v38  ;;  %v1540_v62 = vld [vmem:[%s2483_s8 + $0x20] sm:$0xff]  ;;  %v819_v9 = vld [vmem:[%s2482_s7 + $0x8] sm:$0xff]  ;;  %s1219_s4 = smul.f32 %s2195_s25, %s2189_s24  ;;  %s2426_s25 = sld [smem:[#allocation5 + $0x101]] }
  0x2f   :  { %1776 = vmatprep.subr.bf16.mxu1 %v1930_v3  ;;  %1843 = vlog2.f32 %v2112_v30  ;;  %v1820_v0 = vpack.c.bf16 %v1541_v63, %v1540_v62  ;;  %v818_v10 = vld [vmem:[%s2482_s7] sm:$0xff]  ;;  %s1249_s15 = smul.f32 %s2223_s13, %s2221_s30 }
  0x30   :  { %1647 = vmatmul.mubr.msk.f32.vlgmr.msra.gmra.mrb[0].mxu0 %vm148_vm1, %v136_v16  ;;  %1845 = vrcp.f32 %v118_v32  ;;  %v2157_v1 = vrot.slane %v118_v32, %v2117_v38  ;;  %v2201_v28 = vld [vmem:[%s2478_s3 + $0x2] ss:$0 sm:$0xff]  ;;  %s1267_s16 = smul.f32 %s2225_s14, %s2221_s30 }
  0x31   :  { %1658 = vmatmul.mubr.msk.f32.vlgmr.msra.gmra.mrb[0].mxu1 %vm148_vm1, %v136_v16  ;;  %1772 = vmatpush3.bf16.msra.mxu0 %v1771_v17 }
  0x32   :  { %1778 = vmatpush3.bf16.msra.mxu1 %v1759_v4  ;;  %1773 = vmatprep.subr.bf16.mxu0 %v1930_v3  ;;  %s1309_s21 = smul.f32 %s1558_s20, %s2259_s19 }
  0x33   :  { %1779 = vmatprep.subr.bf16.mxu1 %v1930_v3  ;;  %1668 = vmatprep.mubr.msk.f32.mxu0 %vm1931_vm0, %v1932_v11 }
  0x34   :  { %1679 = vmatprep.mubr.msk.f32.mxu1 %vm1931_vm0, %v1932_v11 }
  0x35   :  { %1775 = vmatpush3.bf16.msra.mxu0 %v1774_v20 }
  0x36   :  { %1781 = vmatpush3.bf16.msra.mxu1 %v1762_v12  ;;  %1782 = vmatprep.subr.bf16.mxu0 %v1930_v3  ;;  %v1838_v27 = vpop.eup %1837 }
  0x37   :  { %1788 = vmatprep.subr.bf16.mxu1 %v1930_v3  ;;  %v81_v33 = vmul.f32 0.6931472, %v1838_v27  ;;  %v1840_v35 = vpop.eup %1839 }
  0x38   :  { %1669 = vmatmul.mubr.msk.f32.vlgmr.msra.gmra.mrb[2].mxu0 %vm148_vm1, %v136_v16  ;;  %v100_v36 = vmul.f32 0.6931472, %v1840_v35  ;;  %v1842_v37 = vpop.eup %1841  ;;  %v79_v16 = vmul.f32 %v2092_v23, %v2092_v23 }
  0x39   :  { %1784 = vmatpush3.bf16.msra.mxu0 %v1765_v8  ;;  %1680 = vmatmul.mubr.msk.f32.vlgmr.msra.gmra.mrb[2].mxu1 %vm148_vm1, %v1519_v21  ;;  %v102_v39 = vmul.f32 0.5, %v1842_v37  ;;  %v1844_v43 = vpop.eup %1843 }
  0x3a   :  { %1790 = vmatpush3.bf16.msra.mxu1 %v1771_v17  ;;  %1785 = vmatprep.subr.bf16.mxu0 %v1930_v3  ;;  %v1170_v40 = vsub.f32 %v100_v36, %v81_v33  ;;  %v120_v45 = vmul.f32 0.6931472, %v1844_v43  ;;  %v1846_v46 = vpop.eup %1845  ;;  %v1224_v56 = vsub.f32 %v81_v33, %v100_v36  ;;  %1847 = vrcp.f32 %v79_v16 }
  0x3b   :  { %1791 = vmatprep.subr.bf16.mxu1 %v1930_v3  ;;  %1690 = vmatprep.mubr.msk.f32.mxu0 %vm1931_vm0, %v1932_v11  ;;  %v2122_v42 = vrot.slane %v102_v39, %v2117_v38  ;;  %v122_v47 = vmul.f32 0.5, %v1846_v46  ;;  %v1177_v27 = vrot.slane %v79_v16, %v2117_v38  ;;  %v1529_v46 = vld [vmem:[%s2482_s7 + $0x10] sm:$0xff] }
  0x3c   :  { %1701 = vmatprep.mubr.msk.f32.mxu1 %vm1931_vm0, %v1932_v11  ;;  %v2119_v41 = vadd.f32 -0.5, %v1170_v40  ;;  %v1200_v48 = vsub.f32 %v120_v45, %v81_v33  ;;  %v1254_v57 = vsub.f32 %v120_v45, %v100_v36  ;;  %v2142_v58 = vadd.f32 -0.5, %v1224_v56 }
  0x3d   :  { %1787 = vmatpush3.bf16.msra.mxu0 %v1768_v13  ;;  %v2129_v50 = vrot.slane %v122_v47, %v2117_v38  ;;  %v1272_v2 = vsub.f32 %v81_v33, %v120_v45  ;;  %v933_v40 = vrot.slane %v2098_v24, %v2117_v38 }
  0x3e   :  { %1793 = vmatpush3.bf16.msra.mxu1 %v1774_v20  ;;  %1794 = vmatprep.subr.bf16.mxu0 %v1930_v3  ;;  %v1191_v44 = vrot.slane %v2119_v41, %v2117_v38  ;;  %v2126_v49 = vadd.f32 -0.5, %v1200_v48  ;;  %v2144_v59 = vadd.f32 -0.5, %v1254_v57  ;;  %v1245_v60 = vrot.slane %v2142_v58, %v2117_v38 }
  0x3f   :  { %1800 = vmatprep.subr.bf16.mxu1 %v1930_v3  ;;  %v935_v41 = vmul.f32 %v1529_v46, %v933_v40 }
  0x40   :  { %1691 = vmatmul.mubr.msk.f32.vlgmr.msra.gmra.mrb[4].mxu0 %vm148_vm1, %v1519_v21  ;;  %v1215_v54 = vrot.slane %v2126_v49, %v2117_v38  ;;  %v1263_v61 = vrot.slane %v2144_v59, %v2117_v38 }
  0x41   :  { %1702 = vmatmul.mubr.msk.f32.vlgmr.msra.gmra.mrb[4].mxu1 %vm148_vm1, %v1519_v21  ;;  %1796 = vmatpush3.bf16.msra.mxu0 %v1759_v4  ;;  %v2159_v4 = vadd.f32 -0.5, %v1272_v2 }
  0x42   :  { %1797 = vmatprep.subr.bf16.mxu0 %v1930_v3  ;;  %1712 = vmatprep.mubr.msk.f32.mxu0 %vm1931_vm0, %v1932_v11 }
  0x43   :  { %1802 = vmatpush3.bf16.msra.mxu1 %v1765_v8  ;;  %1723 = vmatprep.mubr.msk.f32.mxu1 %vm1931_vm0, %v1932_v11  ;;  %v1287_v6 = vrot.slane %v2159_v4, %v2117_v38  ;;  %v824_v8 = vrot.slane %v2092_v23, %v2117_v38  ;;  %v1498_v4 = vld [vmem:[%s2481_s6 + $0x10] sm:$0xff] }
  0x44   :  { %1803 = vmatprep.subr.bf16.mxu1 %v1930_v3  ;;  %v1848_v48 = vpop.eup %1847 }
  0x45   :  { %1799 = vmatpush3.bf16.msra.mxu0 %v1762_v12  ;;  %v827_v12 = vmul.f32 %v824_v8, %v819_v9  ;;  %v826_v14 = vmul.f32 %v824_v8, %v818_v10  ;;  %v83_v52 = vmul.f32 0.5, %v1848_v48 }
  0x46   :  { %1806 = vmatprep.subr.bf16.mxu0 %v1930_v3 }
  0x47   :  { %1805 = vmatpush3.bf16.msra.mxu1 %v1768_v13  ;;  %v2183_v13 = vld [vmem:[%s2478_s3 + $0x1] ss:$0 sm:$0xff] }
  0x48   :  { %1713 = vmatmul.mubr.msk.f32.vlgmr.msra.gmra.mrb[6].mxu0 %vm148_vm1, %v1523_v22  ;;  %1813 = vmatprep.subr.bf16.mxu1 %v1812_v31 }
  0x49   :  { %1808 = vmatpush3.bf16.msra.mxu0 %v1771_v17  ;;  %1734 = vmatprep.mubr.msk.f32.mxu0 %vm1931_vm0, %v1932_v11  ;;  %v2178_v11 = vld [vmem:[%s2478_s3] ss:$0 sm:$0xff]  ;;  %s1195_s3 = smul.f32 %s2192_s0, %s2189_s24  ;;  %s2407_s0 = sld [smem:[#allocation5 + $0x100]] }
  0x4a   :  { %1809 = vmatprep.subr.bf16.mxu0 %v1930_v3  ;;  %1724 = vmatmul.mubr.msk.f32.vlgmr.msra.gmra.mrb[6].mxu1 %vm148_vm1, %v1523_v22  ;;  %v1296_v3 = vsub.f32 %v100_v36, %v120_v45  ;;  %v1530_v45 = vld [vmem:[%s2482_s7 + $0x18] sm:$0xff] }
  0x4b   :  { %1815 = vmatpush3.bf16.msra.mxu1 %v1812_v31  ;;  %v936_v51 = vmul.f32 %v1530_v45, %v933_v40  ;;  %v1196_v63 = vstv %s1195_s3 }
  0x4c   :  { %1817 = vmatprep.subr.bf16.mxu1 %v1816_v53  ;;  %v2161_v5 = vadd.f32 -0.5, %v1296_v3 }
  0x4d   :  { %1811 = vmatpush3.bf16.msra.mxu0 %v1774_v20 }
  0x4e   :  { %1821 = vmatprep.subr.bf16.mxu0 %v1820_v0  ;;  %v1305_v7 = vrot.slane %v2161_v5, %v2117_v38 }
  0x50   :  { %1735 = vmatmul.mubr.msk.f32.vlgmr.msra.gmra.mrb[8].mxu0 %vm148_vm1, %v1523_v22 }
  0x51   :  { %1823 = vmatpush3.bf16.msra.mxu0 %v1820_v0  ;;  %v1220_v0 = vstv %s1219_s4 }
 0x103   :  { %v218_v15 = vpop.f32.mrb[0].mxu0 }
 0x104   :  { %v219_v17 = vadd.f32 %v2178_v11, %v218_v15  ;;  %v1648_v18 = vpop.f32.mrb[1].mxu0  ;;  %v301_v19 = vpop.f32.mrb[0].mxu1 }
 0x105   :  { %v302_v20 = vadd.f32 %v2183_v13, %v301_v19  ;;  %v1659_v21 = vpop.f32.mrb[1].mxu1  ;;  %v1238_v18 = vrot.slane %v83_v52, %v2117_v38 }
 0x106   :  { %v829_v22 = vadd.f32 %v827_v12, %v219_v17  ;;  %v828_v25 = vadd.f32 %v826_v14, %v219_v17 }
 0x107   :  { %v1169_v26 = vsub.f32 %v219_v17, %v302_v20 }
 0x108   :  { %1741 = vmatprep.mubr.msk.f32.mxu1 %vm832_vm2, %v828_v25 }
 0x109   :  { %v1172_v23 = vmul.f32 %v1169_v26, %v1169_v26  ;;  %1742 = vmatmul.mubr.msk.f32.vlgmr.msra.gmra.mrb[8].mxu1 %vm832_vm2, %v829_v22 }
 0x10a   :  { %1819 = vmatpush3.bf16.msra.mxu1 %v1816_v53 }
 0x10b   :  { %v1179_v29 = vadd.f32 %v1177_v27, %v1172_v23  ;;  %v384_v31 = vpop.f32.mrb[2].mxu0 }
 0x10c   :  { %v385_v32 = vadd.f32 %v2201_v28, %v384_v31  ;;  %v1670_v33 = vpop.f32.mrb[3].mxu0  ;;  %v459_v34 = vpop.f32.mrb[2].mxu1 }
 0x10d   :  { %v1186_v35 = vmul.f32 %v2122_v42, %v1179_v29  ;;  %v460_v36 = vadd.f32 %v2178_v11, %v459_v34  ;;  %v1681_v37 = vpop.f32.mrb[3].mxu1  ;;  %v1250_v29 = vstv %s1249_s15 }
 0x10e   :  { %v1199_v39 = vsub.f32 %v219_v17, %v385_v32  ;;  %v1043_v32 = vrot.slane %v2112_v30, %v2117_v38  ;;  %v1499_v38 = vld [vmem:[%s2481_s6 + $0x18] sm:$0xff] }
 0x10f   :  { %v1193_v43 = vadd.f32 %v1191_v44, %v1186_v35 }
 0x110   :  { %v1202_v47 = vmul.f32 %v1199_v39, %v1199_v39 }
 0x111   :  { %v1197_v15 = vmul.f32 %v1196_v63, %v1193_v43 }
 0x112   :  { %v1203_v24 = vadd.f32 %v1202_v47, %v1177_v27 }
 0x113   :  { %v529_v44 = vpop.f32.mrb[4].mxu0 }
 0x114   :  { %v1210_v53 = vmul.f32 %v2129_v50, %v1203_v24  ;;  %v530_v56 = vadd.f32 %v2183_v13, %v529_v44  ;;  %v1692_v57 = vpop.f32.mrb[5].mxu0  ;;  %v599_v62 = vpop.f32.mrb[4].mxu1 }
 0x115   :  { %v600_v2 = vadd.f32 %v2201_v28, %v599_v62  ;;  %v1703_v3 = vpop.f32.mrb[5].mxu1 }
 0x116   :  { %v1217_v8 = vadd.f32 %v1215_v54, %v1210_v53  ;;  %v938_v9 = vadd.f32 %v936_v51, %v530_v56  ;;  %v1223_v10 = vsub.f32 %v530_v56, %v460_v36  ;;  %v937_v12 = vadd.f32 %v935_v41, %v530_v56  ;;  %v1501_v3 = vld [vmem:[%s2481_s6 + $0x20] sm:$0xff] }
 0x117   :  { %v1253_v14 = vsub.f32 %v530_v56, %v600_v2  ;;  %v1310_v56 = vstv %s1309_s21  ;;  %v2293_v2 = vmul.f32 %v1499_v38, %v1499_v38  ;;  %s2363_s21 = sld [smem:[#allocation5 + $0x2]] }
 0x118   :  { %v1221_v16 = vmul.f32 %v1220_v0, %v1217_v8  ;;  %v1226_v17 = vmul.f32 %v1223_v10, %v1223_v10  ;;  %1748 = vmatprep.mubr.msk.f32.mxu1 %vm832_vm2, %v937_v12  ;;  %v1502_v8 = vld [vmem:[%s2481_s6 + $0x28] sm:$0xff]  ;;  %v2311_v12 = vld [vmem:[%s2480_s5] sm:$0xff] }
 0x119   :  { %v1256_v19 = vmul.f32 %v1253_v14, %v1253_v14  ;;  %1749 = vmatmul.mubr.msk.f32.vlgmr.msra.gmra.mrb[10].mxu1 %vm832_vm2, %v938_v9  ;;  %v2303_v9 = vmul.f32 %v1501_v3, %v1501_v3  ;;  %v2306_v10 = vmul.f32 %v1502_v8, %v1502_v8  ;;  %v2316_v14 = vld [vmem:[%s2480_s5 + $0x8] sm:$0xff] }
 0x11a   :  { %v1233_v49 = vadd.f32 %v2140_v55, %v1226_v17  ;;  %v1222_v20 = vadd.f32 %v1221_v16, %v1197_v15  ;;  %v2321_v15 = vld [vmem:[%s2480_s5 + $0x10] sm:$0xff]  ;;  %v2326_v16 = vld [vmem:[%s2480_s5 + $0x18] sm:$0xff] }
 0x11b   :  { %v1257_v54 = vadd.f32 %v1256_v19, %v2140_v55  ;;  %v674_v21 = vpop.f32.mrb[6].mxu0  ;;  %v1268_v55 = vstv %s1267_s16  ;;  %v1331_v17 = vsub.f32 %v2311_v12, %v2321_v15  ;;  %v2338_v19 = vld [vmem:[%s2480_s5 + $0x28] sm:$0xff] }
 0x11c   :  { %v1240_v22 = vmul.f32 %v1238_v18, %v1233_v49  ;;  %v675_v25 = vadd.f32 %v2178_v11, %v674_v21  ;;  %v1714_v26 = vpop.f32.mrb[7].mxu0  ;;  %v1355_v21 = vsub.f32 %v2316_v14, %v2338_v19 }
 0x11d   :  { %v1258_v27 = vmul.f32 %v1257_v54, %v2129_v50  ;;  %v744_v23 = vpop.f32.mrb[6].mxu1  ;;  %v1539_v50 = vld [vmem:[%s2482_s7 + $0x28] sm:$0xff]  ;;  %v1337_v26 = vmul.f32 %v1331_v17, %v1331_v17  ;;  %v1389_v17 = vstv %s2365_s22 }
 0x11e   :  { %v745_v31 = vadd.f32 %v2183_v13, %v744_v23  ;;  %v1725_v33 = vpop.f32.mrb[7].mxu1  ;;  %v1247_v34 = vadd.f32 %v1245_v60, %v1240_v22  ;;  %v1538_v13 = vld [vmem:[%s2482_s7 + $0x20] sm:$0xff]  ;;  %v1046_v58 = vmul.f32 %v1539_v50, %v1043_v32  ;;  %s1291_s7 = smul.f32 %s1556_s2, %s2259_s19 }
 0x11f   :  { %v1265_v11 = vadd.f32 %v1263_v61, %v1258_v27  ;;  %v1045_v60 = vmul.f32 %v1538_v13, %v1043_v32  ;;  %v1374_v27 = vsub.f32 %v2321_v15, %v2311_v12 }
 0x120   :  { %v1251_v35 = vmul.f32 %v1250_v29, %v1247_v34  ;;  %v1292_v44 = vstv %s1291_s7 }
 0x121   :  { %v1269_v30 = vmul.f32 %v1268_v55, %v1265_v11  ;;  %v1361_v55 = vmul.f32 %v1355_v21, %v1355_v21  ;;  %v1375_v11 = vsub.f32 %v2326_v16, %v2316_v14  ;;  %v1380_v50 = vmul.f32 %v1374_v27, %v1374_v27 }
 0x122   :  { %v1252_v36 = vadd.f32 %v1251_v35, %v1222_v20  ;;  %v1332_v20 = vsub.f32 %v2316_v14, %v2326_v16 }
 0x123   :  { %v814_v37 = vpop.f32.mrb[8].mxu0 }
 0x124   :  { %v815_v59 = vadd.f32 %v2201_v28, %v814_v37  ;;  %v1736_v61 = vpop.f32.mrb[9].mxu0  ;;  %v1270_v39 = vadd.f32 %v1269_v30, %v1252_v36 }
 0x126   :  { %v1048_v40 = vadd.f32 %v1046_v58, %v815_v59  ;;  %v1271_v43 = vsub.f32 %v815_v59, %v675_v25  ;;  %v1295_v45 = vsub.f32 %v815_v59, %v745_v31  ;;  %v1047_v46 = vadd.f32 %v1045_v60, %v815_v59 }
 0x127   :  { %v1338_v31 = vmul.f32 %v1332_v20, %v1332_v20 }
 0x128   :  { %v1274_v47 = vmul.f32 %v1271_v43, %v1271_v43  ;;  %v1298_v48 = vmul.f32 %v1295_v45, %v1295_v45  ;;  %1755 = vmatprep.mubr.msk.f32.mxu0 %vm832_vm2, %v1047_v46 }
 0x129   :  { %1756 = vmatmul.mubr.msk.f32.vlgmr.msra.gmra.mrb[10].mxu0 %vm832_vm2, %v1048_v40 }
 0x12a   :  { %v1281_v24 = vadd.f32 %v2157_v1, %v1274_v47  ;;  %v1299_v51 = vadd.f32 %v1298_v48, %v2157_v1  ;;  %v84_v1 = vld [vmem:[%s2481_s6] sm:$0xff] }
 0x12b   :  { %1849 = vlog2.f32 %v84_v1  ;;  %v86_v5 = vmul.f32 %v84_v1, %v84_v1 }
 0x12c   :  { %v1282_v41 = vmul.f32 %v1281_v24, %v1238_v18  ;;  %v1300_v28 = vmul.f32 %v1299_v51, %v2122_v42  ;;  %v85_v42 = vld [vmem:[%s2481_s6 + $0x8] sm:$0xff]  ;;  %v2333_v18 = vld [vmem:[%s2480_s5 + $0x20] sm:$0xff]  ;;  %s2354_s5 = sld [smem:[#allocation5 + $0x1]] }
 0x12d   :  { %1851 = vlog2.f32 %v85_v42  ;;  %v1354_v54 = vsub.f32 %v2311_v12, %v2333_v18  ;;  %v1339_v30 = vadd.f32 %v1337_v26, %v86_v5 }
 0x12e   :  { %v1289_v52 = vadd.f32 %v1287_v6, %v1282_v41  ;;  %v1307_v53 = vadd.f32 %v1305_v7, %v1300_v28  ;;  %v2289_v6 = vmul.f32 %v85_v42, %v85_v42  ;;  %v2291_v7 = vmul.f32 %v1498_v4, %v1498_v4 }
 0x12f   :  { %1853 = vlog2.f32 %v1498_v4  ;;  %v1360_v32 = vmul.f32 %v1354_v54, %v1354_v54 }
 0x130   :  { %v1293_v57 = vmul.f32 %v1292_v44, %v1289_v52  ;;  %v1311_v63 = vmul.f32 %v1310_v56, %v1307_v53  ;;  %1855 = vlog2.f32 %v1499_v38  ;;  %v1340_v58 = vadd.f32 %v1338_v31, %v2289_v6 }
 0x131   :  { %1857 = vrcp.f32 %v86_v5  ;;  %v1362_v60 = vadd.f32 %v1360_v32, %v86_v5  ;;  %v1382_v47 = vadd.f32 %v1380_v50, %v2291_v7 }
 0x132   :  { %v1294_v62 = vadd.f32 %v1293_v57, %v1270_v39  ;;  %1859 = vrcp.f32 %v2289_v6  ;;  %v1381_v39 = vmul.f32 %v1375_v11, %v1375_v11  ;;  %v1346_v56 = vstv %s2354_s5 }
 0x133   :  { %1861 = vrcp.f32 %v2291_v7  ;;  %v1363_v57 = vadd.f32 %v1361_v55, %v2289_v6 }
 0x134   :  { %v2275_v0 = vadd.f32 %v1311_v63, %v1294_v62  ;;  %1863 = vrcp.f32 %v2293_v2  ;;  %v1383_v28 = vadd.f32 %v1381_v39, %v2293_v2 }
 0x135   :  { %1865 = vlog2.f32 %v1501_v3  ;;  %v1850_v49 = vpop.eup %1849 }
 0x136   :  { %1867 = vlog2.f32 %v1502_v8  ;;  %v2347_v25 = vmul.f32 0.6931472, %v1850_v49 }
 0x137   :  { %1869 = vrcp.f32 %v2303_v9  ;;  %v1852_v22 = vpop.eup %1851 }
 0x138   :  { %1871 = vrcp.f32 %v2306_v10  ;;  %v2352_v29 = vmul.f32 0.6931472, %v1852_v22 }
 0x139   :  { %v1854_v23 = vpop.eup %1853 }
 0x13a   :  { %v1856_v33 = vpop.eup %1855  ;;  %v2356_v34 = vmul.f32 0.6931472, %v1854_v23  ;;  %v1369_v23 = vstv %s2363_s21 }
 0x13b   :  { %v1858_v13 = vpop.eup %1857  ;;  %v2360_v35 = vmul.f32 0.6931472, %v1856_v33 }
 0x13c   :  { %v1860_v36 = vpop.eup %1859  ;;  %v2367_v37 = vmul.f32 0.5, %v1858_v13  ;;  %v1333_v59 = vsub.f32 %v2356_v34, %v2347_v25  ;;  %v1376_v61 = vsub.f32 %v2347_v25, %v2356_v34 }
 0x13d   :  { %v1862_v40 = vpop.eup %1861  ;;  %v2373_v43 = vmul.f32 0.5, %v1860_v36  ;;  %v1334_v45 = vsub.f32 %v2360_v35, %v2352_v29  ;;  %v1377_v46 = vsub.f32 %v2352_v29, %v2360_v35 }
 0x13e   :  { %v1864_v48 = vpop.eup %1863  ;;  %v2380_v24 = vmul.f32 0.5, %v1862_v40  ;;  %v1561_v51 = vadd.f32 -0.5, %v1333_v59  ;;  %v1569_v41 = vadd.f32 -0.5, %v1376_v61  ;;  %v1384_v4 = vmul.f32 %v1382_v47, %v2367_v37 }
 0x13f   :  { %v1866_v44 = vpop.eup %1865  ;;  %v2383_v52 = vmul.f32 0.5, %v1864_v48  ;;  %v1562_v53 = vadd.f32 -0.5, %v1334_v45  ;;  %v1570_v42 = vadd.f32 -0.5, %v1377_v46  ;;  %v1385_v8 = vmul.f32 %v1383_v28, %v2373_v43 }
 0x140   :  { %v1868_v62 = vpop.eup %1867  ;;  %v2389_v63 = vmul.f32 0.6931472, %v1866_v44  ;;  %v1341_v1 = vmul.f32 %v1339_v30, %v2380_v24  ;;  %v1386_v21 = vadd.f32 %v1569_v41, %v1384_v4  ;;  %v1394_v59 = vsub.f32 %v2321_v15, %v2333_v18 }
 0x141   :  { %v1870_v38 = vpop.eup %1869  ;;  %v2393_v5 = vmul.f32 0.6931472, %v1868_v62  ;;  %v1342_v3 = vmul.f32 %v1340_v58, %v2383_v52  ;;  %v1387_v55 = vadd.f32 %v1570_v42, %v1385_v8  ;;  %v1395_v61 = vsub.f32 %v2326_v16, %v2338_v19 }
 0x142   :  { %v1872_v6 = vpop.eup %1871  ;;  %v133_v49 = vmul.f32 0.5, %v1870_v38  ;;  %v1343_v20 = vadd.f32 %v1561_v51, %v1341_v1  ;;  %v1356_v54 = vsub.f32 %v2389_v63, %v2347_v25  ;;  %v1390_v30 = vmul.f32 %v1389_v17, %v1386_v21 }
 0x143   :  { %v135_v22 = vmul.f32 0.5, %v1872_v6  ;;  %v1344_v26 = vadd.f32 %v1562_v53, %v1342_v3  ;;  %v1357_v27 = vsub.f32 %v2393_v5, %v2352_v29  ;;  %v1391_v36 = vmul.f32 %v1389_v17, %v1387_v55 }
 0x144   :  { %v1347_v31 = vmul.f32 %v1346_v56, %v1343_v20  ;;  %v1566_v32 = vadd.f32 -0.5, %v1356_v54  ;;  %v1364_v33 = vmul.f32 %v1362_v60, %v133_v49  ;;  %v1396_v40 = vsub.f32 %v2389_v63, %v2356_v34 }
 0x145   :  { %v1348_v11 = vmul.f32 %v1346_v56, %v1344_v26  ;;  %v1567_v50 = vadd.f32 -0.5, %v1357_v27  ;;  %v1365_v13 = vmul.f32 %v1363_v57, %v135_v22  ;;  %v1397_v60 = vsub.f32 %v2393_v5, %v2360_v35 }
 0x146   :  { %v1366_v58 = vadd.f32 %v1566_v32, %v1364_v33  ;;  %v1409_v45 = vstv %s2387_s23  ;;  %v1400_v47 = vmul.f32 %v1394_v59, %v1394_v59  ;;  %v1401_v48 = vmul.f32 %v1395_v61, %v1395_v61 }
 0x147   :  { %v1367_v39 = vadd.f32 %v1567_v50, %v1365_v13  ;;  %v1414_v51 = vsub.f32 %v2333_v18, %v2311_v12  ;;  %v1572_v28 = vadd.f32 -0.5, %v1396_v40  ;;  %v1573_v44 = vadd.f32 -0.5, %v1397_v60 }
 0x148   :  { %v1370_v46 = vmul.f32 %v1369_v23, %v1366_v58  ;;  %v1415_v53 = vsub.f32 %v2338_v19, %v2316_v14  ;;  %v1402_v57 = vadd.f32 %v1400_v47, %v2291_v7  ;;  %v1403_v62 = vadd.f32 %v1401_v48, %v2293_v2  ;;  %v914_v47 = vld [vmem:[%s2476_s1] sm:$0xff] }
 0x149   :  { %v1371_v41 = vmul.f32 %v1369_v23, %v1367_v39  ;;  %v1416_v1 = vsub.f32 %v2347_v25, %v2389_v63  ;;  %v1417_v4 = vsub.f32 %v2352_v29, %v2393_v5  ;;  %v1420_v12 = vmul.f32 %v1414_v51, %v1414_v51 }
 0x14a   :  { %v1372_v56 = vadd.f32 %v1370_v46, %v1347_v31  ;;  %v1421_v38 = vmul.f32 %v1415_v53, %v1415_v53  ;;  %v1404_v8 = vmul.f32 %v1402_v57, %v133_v49  ;;  %v1405_v17 = vmul.f32 %v1403_v62, %v135_v22 }
 0x14b   :  { %v1373_v42 = vadd.f32 %v1371_v41, %v1348_v11  ;;  %v1575_v6 = vadd.f32 -0.5, %v1416_v1  ;;  %v1576_v20 = vadd.f32 -0.5, %v1417_v4  ;;  %v1422_v7 = vadd.f32 %v1420_v12, %v2303_v9  ;;  %v1536_v41 = vld [vmem:[%s2476_s1 + $0x18] sm:$0xff] }
 0x14c   :  { %v1392_v3 = vadd.f32 %v1390_v30, %v1372_v56  ;;  %v1423_v2 = vadd.f32 %v1421_v38, %v2306_v10  ;;  %v1406_v25 = vadd.f32 %v1572_v28, %v1404_v8  ;;  %v1407_v54 = vadd.f32 %v1573_v44, %v1405_v17  ;;  %v1535_v28 = vld [vmem:[%s2476_s1 + $0x10] sm:$0xff] }
 0x14d   :  { %v1393_v14 = vadd.f32 %v1391_v36, %v1373_v42  ;;  %v1429_v21 = vstv %s2407_s0  ;;  %v1434_v29 = vsub.f32 %v2333_v18, %v2321_v15  ;;  %v1424_v26 = vmul.f32 %v1422_v7, %v2367_v37  ;;  %v1545_v7 = vld [vmem:[%s2476_s1 + $0x28] sm:$0xff] }
 0x14e   :  { %v1425_v49 = vmul.f32 %v1423_v2, %v2373_v43  ;;  %v1435_v22 = vsub.f32 %v2338_v19, %v2326_v16  ;;  %v1436_v27 = vsub.f32 %v2356_v34, %v2389_v63  ;;  %v1410_v23 = vmul.f32 %v1409_v45, %v1406_v25  ;;  %v1544_v2 = vld [vmem:[%s2476_s1 + $0x20] sm:$0xff] }
 0x14f   :  { %v1411_v31 = vmul.f32 %v1409_v45, %v1407_v54  ;;  %v1437_v32 = vsub.f32 %v2360_v35, %v2393_v5  ;;  %v1440_v33 = vmul.f32 %v1434_v29, %v1434_v29  ;;  %v1426_v55 = vadd.f32 %v1575_v6, %v1424_v26 }
 0x150   :  { %v1427_v11 = vadd.f32 %v1576_v20, %v1425_v49  ;;  %v1441_v15 = vmul.f32 %v1435_v22, %v1435_v22  ;;  %v1412_v18 = vadd.f32 %v1410_v23, %v1392_v3  ;;  %v1578_v50 = vadd.f32 -0.5, %v1436_v27 }
 0x151   :  { %v1413_v37 = vadd.f32 %v1411_v31, %v1393_v14  ;;  %v1442_v43 = vadd.f32 %v1440_v33, %v2303_v9  ;;  %v1430_v13 = vmul.f32 %v1429_v21, %v1426_v55  ;;  %v1579_v19 = vadd.f32 -0.5, %v1437_v32 }
 0x152   :  { %v1431_v16 = vmul.f32 %v1429_v21, %v1427_v11  ;;  %v1443_v34 = vadd.f32 %v1441_v15, %v2306_v10  ;;  %v1449_v58 = vstv %s2426_s25  ;;  %v921_v62 = vstv %s2189_s24  ;;  %s1486_s25 = sshll.u32 %s2487_s12, 4  ;;  %s1487_s25 = int_to_ptr.vmem [resolvable:$true] %s1486_s25 }
 0x153   :  { %v1444_v63 = vmul.f32 %v1442_v43, %v2380_v24  ;;  %v1432_v35 = vadd.f32 %v1430_v13, %v1412_v18  ;;  %v1031_v42 = vstv %s2221_s30  ;;  %v1141_v29 = vstv %s2259_s19  ;;  %p1914_p2 = scmp.lt.s32.totalorder %s1487_s25, %s1487_s25 }
 0x154   :  { %v1445_v30 = vmul.f32 %v1443_v34, %v2383_v52  ;;  %v1433_v36 = vadd.f32 %v1431_v16, %v1413_v37  ;;  %v915_v52 = vld [vmem:[%s2476_s1 + $0x8] sm:$0xff]  ;;  %v1313_v15 = vsel %vm832_vm2, %v2275_v0, 0.0  ;;  %s1146_s1 = sadd.f32 %s2221_s30, %s2189_s24  ;;  %s1909_s30 = scalar_lea.vmem %s1487_s25, 16 }
 0x155   :  { %v1446_v5 = vadd.f32 %v1578_v50, %v1444_v63  ;;  %p1910_p1 = scmp.ne.s32.totalorder %s1487_s25, %s1909_s30  ;;  %p1915_p3 = scmp.lt.s32.totalorder %s1909_s30, %s1909_s30 }
 0x156   :  { %v1447_v59 = vadd.f32 %v1579_v19, %v1445_v30  ;;  %s1147_s6 = sadd.f32 %s2259_s19, %s1146_s1 }
 0x157   :  { %v1450_v61 = vmul.f32 %v1449_v58, %v1446_v5  ;;  %p1916_p4 = por %p1915_p3, %p1914_p2 }
 0x158   :  { %v1451_v39 = vmul.f32 %v1449_v58, %v1447_v59  ;;  %s1164_s11 = smul.f32 58.812065, %s1147_s6 }
 0x159   :  { %v1452_v40 = vadd.f32 %v1450_v61, %v1432_v35  ;;  %p1917_p5 = pnand %p1916_p4, %p1910_p1 }
 0x15a   :  { %v1453_v60 = vadd.f32 %v1451_v39, %v1433_v36 }
 0x15b   :  { %v1455_v9 = vsel %vm1454_vm3, %v1452_v40, 0.0 }
 0x15c   :  { %v1456_v45 = vsel %vm1454_vm3, %v1453_v60, 0.0 }
 0x15d   :  { %v1457_v46 = vadd.f32 %v1456_v45, %v1455_v9 }
 0x15f   :  { %1458 = vadd.xlane.f32.xlu1 %v1457_v46 }
 0x1dc   :  { %v1743_v10 = vpop.f32.mrb[8].mxu1 }
 0x1dd   :  { %v905_v24 = vpop.f32.mrb[9].mxu1  ;;  %v917_v48 = vsub.f32 %v1743_v10, %v915_v52 }
 0x1de   :  { %v916_v51 = vsub.f32 %v905_v24, %v914_v47 }
 0x1df   :  { %v920_v53 = vmul.f32 %v917_v48, %v917_v48 }
 0x1e0   :  { %v919_v1 = vmul.f32 %v916_v51, %v916_v51 }
 0x1e1   :  { %v923_v3 = vmul.f32 %v921_v62, %v920_v53 }
 0x1e2   :  { %v922_v17 = vmul.f32 %v921_v62, %v919_v1 }
 0x1ec   :  { %v1750_v44 = vpop.f32.mrb[10].mxu1  ;;  %v1459_v18 = vpop.xlane.xlu1 %1458 }
 0x1ed   :  { %v1027_v56 = vsub.f32 %v1750_v44, %v1536_v41  ;;  %v1014_v57 = vpop.f32.mrb[11].mxu1  ;;  %v1460_v37 = vrot.slane %v1459_v18, 4 }
 0x1ee   :  { %v1026_v4 = vsub.f32 %v1014_v57, %v1535_v28 }
 0x1ef   :  { %v1030_v12 = vmul.f32 %v1027_v56, %v1027_v56  ;;  %v1461_v43 = vadd.f32 %v1460_v37, %v1459_v18 }
 0x1f0   :  { %v1029_v38 = vmul.f32 %v1026_v4, %v1026_v4 }
 0x1f1   :  { %v1033_v8 = vmul.f32 %v1031_v42, %v1030_v12  ;;  %v1462_v19 = vrot.slane %v1461_v43, 2 }
 0x1f2   :  { %v1032_v6 = vmul.f32 %v1031_v42, %v1029_v38 }
 0x1f3   :  { %v1035_v14 = vadd.f32 %v1033_v8, %v923_v3  ;;  %v1463_v5 = vadd.f32 %v1462_v19, %v1461_v43 }
 0x1f4   :  { %v1034_v20 = vadd.f32 %v1032_v6, %v922_v17 }
 0x1f5   :  { %v1464_v39 = vrot.slane %v1463_v5, 1 }
 0x1f7   :  { %v1465_v9 = vadd.f32 %v1464_v39, %v1463_v5 }
 0x1fc   :  { %v1757_v25 = vpop.f32.mrb[10].mxu0 }
 0x1fd   :  { %v1137_v54 = vsub.f32 %v1757_v25, %v1545_v7  ;;  %v1124_v21 = vpop.f32.mrb[11].mxu0 }
 0x1fe   :  { %v1136_v26 = vsub.f32 %v1124_v21, %v1544_v2 }
 0x1ff   :  { %v1140_v49 = vmul.f32 %v1137_v54, %v1137_v54 }
 0x200   :  { %v1139_v22 = vmul.f32 %v1136_v26, %v1136_v26 }
 0x201   :  { %v1143_v27 = vmul.f32 %v1141_v29, %v1140_v49 }
 0x202   :  { %v1142_v23 = vmul.f32 %v1141_v29, %v1139_v22 }
 0x203   :  { %v1145_v31 = vadd.f32 %v1143_v27, %v1035_v14 }
 0x204   :  { %v1144_v32 = vadd.f32 %v1142_v23, %v1034_v20 }
 0x205   :  { %v1149_v33 = vsel %vm832_vm2, %v1145_v31, 0.0 }
 0x206   :  { %v1148_v55 = vsel %vm832_vm2, %v1144_v32, 0.0 }
 0x207   :  { %v1150_v11 = vadd.f32 %v1149_v33, %v1148_v55 }
 0x209   :  { %1151 = vadd.xlane.f32.xlu0 %v1150_v11 }
 0x20d   :  { %1314 = vadd.xlane.f32.xlu0 %v1313_v15 }
 0x296   :  { %v1152_v50 = vpop.xlane.xlu0 %1151 }
 0x297   :  { %v1153_v13 = vrot.slane %v1152_v50, 4 }
 0x299   :  { %v1154_v16 = vadd.f32 %v1153_v13, %v1152_v50 }
 0x29a   :  { %v1315_v34 = vpop.xlane.xlu0 %1314 }
 0x29b   :  { %v1155_v63 = vrot.slane %v1154_v16, 2  ;;  %v1316_v30 = vrot.slane %v1315_v34, 4 }
 0x29d   :  { %v1317_v58 = vadd.f32 %v1316_v30, %v1315_v34  ;;  %v1156_v35 = vadd.f32 %v1155_v63, %v1154_v16 }
 0x29f   :  { %v1318_v36 = vrot.slane %v1317_v58, 2  ;;  %v1157_v59 = vrot.slane %v1156_v35, 1 }
 0x2a1   :  { %v1319_v0 = vadd.f32 %v1318_v36, %v1317_v58  ;;  %v1158_v61 = vadd.f32 %v1157_v59, %v1156_v35 }
 0x2a3   :  { %1824 = vpush %v1158_v61  ;;  %v1320_v40 = vrot.slane %v1319_v0, 1 }
 0x2a5   :  { %v1321_v60 = vadd.f32 %v1320_v40, %v1319_v0 }
 0x2a7   :  { %1826 = vpush %v1321_v60 }
 0x2a8   :  { %1828 = vpush %v1465_v9 }
 0x2d4   :  { %s1825_s17 = spop %1824 }
 0x2d5   :  { %s1160_s8 = smul.f32 0.5, %s1825_s17 }
 0x2d7   :  { %s1163_s18 = smul.f32 0.25, %s1160_s8 }
 0x2d8   :  { %s1827_s2 = spop %1826 }
 0x2d9   :  { %s1165_s20 = sadd.f32 %s1164_s11, %s1163_s18  ;;  %s1325_s7 = smul.f32 0.33333334, %s1827_s2 }
 0x2da   :  { %s1829_s5 = spop %1828 }
 0x2db   :  { %s1168_s21 = smul.f32 0.041666668, %s1165_s20  ;;  %1477 = sst [smem:[#allocation8 + $0x2]] %s1325_s7 }
 0x2dc   :  { %s1469_s22 = smul.f32 0.33333334, %s1829_s5 }
 0x2dd   :  { %1475 = sst [smem:[#allocation8 + $0x1]] %s1168_s21 }
 0x2de   :  { %s1470_s26 = sadd.f32 %s1325_s7, %s1168_s21 }
 0x2df   :  { %1479 = sst [smem:[#allocation8 + $0x3]] %s1469_s22 }
 0x2e0   :  { %s1471_s24 = sadd.f32 %s1470_s26, %s1469_s22 }
 0x2e2   :  { %1473 = sst [smem:[#allocation8]] %s1471_s24 }
 0x2e3   :  { %1920 = shalt.err (!%p1917_p5)
}
 0x2e4   :  { %s1933_s19 = smov [#allocation8]  }
 0x2e5   :  { %1489 = dma.smem_to_vmem %s1933_s19, 16, %s1487_s25, [#allocation4]  }
 0x2e6   :  { %1925 = dma.done.wait [#allocation4], 16  }
 0x2e7   :  { %1926 = vsyncadd [#allocation4], 4294967280 }
 0x2e8   :  { %1493 = sfence }
 0x2e9   :  { %1494 = vsyncpa [#allocation3], 1 }
 0x2ea   :  { %1495 = vsyncpa [#allocation6], 1 }
 0x2eb   :  { %1496 = vsyncpa [#allocation4], 1 }

</bundles_post_ra>
